<compile_context>
chip_gen: v5e
topology: v5e:2x2
jax: 0.10.0
libtpu: 0.0.40
codegen_flags: <defaults>
</compile_context>

<pallas_src>
import functools
import math

import numpy as np
import jax
import jax.numpy as jnp
from jax.experimental import pallas as pl
from jax.experimental.pallas import tpu as pltpu

_INV_SQRT2 = 0.7071067811865476


def _gelu_exact(x):
    # torch.nn.GELU() default = exact erf formulation (kept in f32).
    return 0.5 * x * (1.0 + jax.lax.erf(x * _INV_SQRT2))


def _round_up(v, m):
    return ((v + m - 1) // m) * m


# --------------------------------- kernel ---------------------------------
def _vae_kernel(n_enc, n_dec, z_size, d_in, maxd, x_ref, w_ref, b_ref, out_ref):
    """Fused encoder -> reparameterize -> decoder for one batch tile.

    Weights are zero-padded to (maxd, maxd) and stacked in `w_ref` (L, maxd, maxd);
    biases in `b_ref` (L, 1, maxd). Because the padding is exactly zero, padded
    lanes of every activation stay exactly zero, so the whole pipeline runs at a
    uniform lane-dense width `maxd` and matches the unpadded math.
    """
    x = x_ref[...]

    def lin(h, l):
        # Default MXU precision is fine at these widths; switch to
        # precision=jax.lax.Precision.HIGHEST if strict f32 accumulation is
        # ever required for much larger hidden dims.
        return jnp.dot(h, w_ref[l], preferred_element_type=jnp.float32) + b_ref[l]

    # ---- encoder: Linear (+GELU after all but the last Linear) ----
    h = x
    for i in range(n_enc):
        h = lin(h, i)
        if i < n_enc - 1:
            h = _gelu_exact(h)
    # h lanes: [0, z) = mean, [d_in, d_in+z) = logvar, every other lane exactly 0.

    # ---- reparameterize + decoder layer 0, fused and full lane width ----
    # x lanes [d_in, d_in+z) hold the noise; w_ref[n_enc] holds W0 at rows
    # [0, z) AND rows [d_in, d_in+z), zeros elsewhere, so
    #   u @ w_ref[n_enc] = mean @ W0 + (exp(0.5*logvar)*noise) @ W0 = z @ W0.
    # Garbage lanes of u (real x data at lanes [z, d_in)) only hit zero rows.
    lane = jax.lax.broadcasted_iota(jnp.int32, h.shape, 1)
    u = jnp.where(lane < z_size, h, jnp.exp(0.5 * h) * x)
    d = jnp.dot(u, w_ref[n_enc], preferred_element_type=jnp.float32) + b_ref[n_enc]
    if n_dec > 1:
        d = _gelu_exact(d)
    for i in range(1, n_dec):
        d = lin(d, n_enc + i)
        if i < n_dec - 1:
            d = _gelu_exact(d)

    # ---- fused, fully-written, lane-dense output slab: [imgs | encoder head] ----
    out_ref[:, :maxd] = d
    out_ref[:, maxd:] = h


# ----------------------- one-time host-side packing ------------------------
def pack_vae_params(enc_params, dec_params, input_dim):
    """Packs all layers into one (L, maxd, maxd) weight stack + (L, 1, maxd) bias
    stack (zero padded). Call ONCE and reuse; this keeps per-forward wrapper work
    to two pad/scatter ops on x."""
    params = list(enc_params) + list(dec_params)
    L = len(params)
    n_enc, n_dec = len(enc_params), len(dec_params)
    z_size = enc_params[-1][0].shape[1] // 2
    d_out = dec_params[-1][0].shape[1]
    # Uniform lane-dense width covering every layer dim. For this model maxd=128,
    # which maps 1:1 onto the v5e 128x128 MXU tiles (do not widen).
    # TODO(synk): for much larger models, pack per-layer (Kpad, Npad) tiles instead
    # of a single global maxd to keep the resident weight slab small on v7x.
    maxd = _round_up(max([input_dim] + [w.shape[1] for (w, _) in params]), 128)
    # TODO(synk): fall back to a separate noise operand when input_dim+z_size > maxd.
    assert input_dim + z_size <= maxd, "noise fold needs free pad lanes in x"

    w_stack = np.zeros((L, maxd, maxd), np.float32)
    b_stack = np.zeros((L, 1, maxd), np.float32)
    for l, (w, b) in enumerate(params):
        w = np.asarray(w, np.float32)
        b = np.asarray(b, np.float32)
        if l == n_enc - 1:
            # Last encoder layer: mean cols -> lanes [0, z),
            # logvar cols -> lanes [d_in, d_in+z) (aligned with the folded noise).
            w_stack[l, :w.shape[0], :z_size] = w[:, :z_size]
            w_stack[l, :w.shape[0], input_dim:input_dim + z_size] = w[:, z_size:2 * z_size]
            b_stack[l, 0, :z_size] = b[:z_size]
            b_stack[l, 0, input_dim:input_dim + z_size] = b[z_size:2 * z_size]
        elif l == n_enc:
            # Decoder layer 0: W0 at rows [0, z) (hit by mean) and at rows
            # [d_in, d_in+z) (hit by exp(0.5*logvar)*noise) -> full-width matmul.
            w_stack[l, :z_size, :w.shape[1]] = w
            w_stack[l, input_dim:input_dim + z_size, :w.shape[1]] = w
            b_stack[l, 0, :b.shape[0]] = b
        else:
            w_stack[l, :w.shape[0], :w.shape[1]] = w
            b_stack[l, 0, :b.shape[0]] = b

    return {
        "w_stack": jnp.asarray(w_stack),
        "b_stack": jnp.asarray(b_stack),
        "maxd": maxd, "n_enc": n_enc, "n_dec": n_dec,
        "z_size": z_size, "d_in": input_dim, "d_out": d_out,
    }


# ------------------------------ forward wrapper ----------------------------
def vae_forward_pallas(x, noise, packed, tb=None):
    w_stack, b_stack = packed["w_stack"], packed["b_stack"]
    maxd, n_enc, n_dec = packed["maxd"], packed["n_enc"], packed["n_dec"]
    z_size, d_in, d_out = packed["z_size"], packed["d_in"], packed["d_out"]
    L = w_stack.shape[0]
    B = x.shape[0]

    # Batch tile: cap it and prefer >=2 grid steps so (a) x/out DMAs are
    # double-buffered behind compute, (b) VMEM stays bounded as B grows
    # (v5e 16 MiB scoped default, v7x 64 MiB physical), and (c) the "parallel"
    # grid axis can be sharded across v7x's two TensorCores.
    if tb is None:
        b8 = _round_up(B, 8)
        cap = 512
        n_steps = max(pl.cdiv(b8, cap), 2 if b8 > 8 else 1)
        tb = _round_up(pl.cdiv(B, n_steps), 8)
    tb = max(8, _round_up(tb, 8))
    B_pad = _round_up(max(B, tb), tb)
    grid = (B_pad // tb,)

    # Zero-pad x to the uniform lane width; fold the reparameterization noise
    # into the (otherwise zero) pad lanes [d_in, d_in+z) -> one fewer input DMA.
    x_pad = jnp.zeros((B_pad, maxd), jnp.float32)
    x_pad = x_pad.at[:B, :d_in].set(x.astype(jnp.float32))
    x_pad = x_pad.at[:B, d_in:d_in + z_size].set(noise.astype(jnp.float32))

    out_width = 2 * maxd
    in_specs = [
        pl.BlockSpec((tb, maxd), lambda i: (i, 0)),           # x (+ folded noise)
        # Grid-invariant blocks: the index map is constant, so Pallas fetches
        # the packed weights/biases once and reuses them every step.
        pl.BlockSpec((L, maxd, maxd), lambda i: (0, 0, 0)),   # packed weights
        pl.BlockSpec((L, 1, maxd), lambda i: (0, 0, 0)),      # packed biases
    ]
    out_specs = pl.BlockSpec((tb, out_width), lambda i: (i, 0))
    out_shape = jax.ShapeDtypeStruct((B_pad, out_width), jnp.float32)

    # Advisory cost hint, computed on the padded widths the kernel actually runs.
    flops = 2 * B_pad * maxd * maxd * L
    transcendentals = B_pad * maxd * ((n_enc - 1) + (n_dec - 1) + 1)
    bytes_accessed = 4 * (x_pad.size + w_stack.size + b_stack.size + B_pad * out_width)
    cost = pl.CostEstimate(flops=int(flops), transcendentals=int(transcendentals),
                           bytes_accessed=int(bytes_accessed))

    kernel = functools.partial(_vae_kernel, n_enc, n_dec, z_size, d_in, maxd)
    out = pl.pallas_call(
        kernel,
        grid=grid,
        in_specs=in_specs,
        out_specs=out_specs,
        out_shape=out_shape,
        compiler_params=pltpu.CompilerParams(
            dimension_semantics=("parallel",),
            vmem_limit_bytes=32 * 1024 * 1024),
        cost_estimate=cost,
    )(x_pad, w_stack, b_stack)

    # Free XLA slices recover the module's outputs; z is recomputed here
    # (2 ops on a (B, z) array) so the kernel's output slab stays fully dense.
    imgs = out[:B, :d_out]
    mean = out[:B, maxd:maxd + z_size]
    logvar = out[:B, maxd + d_in:maxd + d_in + z_size]
    z = mean + jnp.exp(0.5 * logvar) * noise
    return {"imgs": imgs, "z": z, "mean": mean, "logvar": logvar}


# ---------------------- plain-JAX reference (for checking) ----------------------
def vae_forward_ref(x, noise, enc_params, dec_params):
    h = x
    for i, (w, b) in enumerate(enc_params):
        h = h @ w + b
        if i < len(enc_params) - 1:
            h = _gelu_exact(h)
    z_size = noise.shape[-1]
    mean, logvar = h[:, :z_size], h[:, z_size:2 * z_size]
    z = mean + jnp.exp(logvar * 0.5) * noise
    d = z
    for i, (w, b) in enumerate(dec_params):
        d = d @ w + b
        if i < len(dec_params) - 1:
            d = _gelu_exact(d)
    return {"imgs": d, "z": z, "mean": mean, "logvar": logvar}


# ---------------------- deterministic parameter init ----------------------
def init_linear_chain(key, dims):
    """Mimics torch.nn.Linear default init: U(-1/sqrt(fan_in), 1/sqrt(fan_in))."""
    params = []
    for i in range(len(dims) - 1):
        fan_in, fan_out = dims[i], dims[i + 1]
        key, kw, kb = jax.random.split(key, 3)
        bound = 1.0 / math.sqrt(fan_in)
        w = jax.random.uniform(kw, (fan_in, fan_out), jnp.float32, -bound, bound)
        b = jax.random.uniform(kb, (fan_out,), jnp.float32, -bound, bound)
        params.append((w, b))
    return params, key


if __name__ == "__main__":
    # Small, VAE-consistent shapes: flattened "image" of 64 features,
    # hidden_dims = [128, 32, 16, 4]  =>  z_size = 2.
    input_dim = 64
    hidden_dims = [128, 32, 16, 4]
    z_size = hidden_dims[-1] // 2
    batch = 16

    encoding_dims = [input_dim] + hidden_dims              # [64,128,32,16,4]
    decoding_dims = [z_size] + encoding_dims[::-1]         # [2,4,16,32,128,64]

    key = jax.random.PRNGKey(0)
    enc_params, key = init_linear_chain(key, encoding_dims)
    dec_params, key = init_linear_chain(key, decoding_dims)

    key, kx, kn = jax.random.split(key, 3)
    x = jax.random.normal(kx, (batch, input_dim), jnp.float32)
    # Reparameterization noise (torch.randn_like) is sampled outside the kernel.
    noise = jax.random.normal(kn, (batch, z_size), jnp.float32)

    packed = pack_vae_params(enc_params, dec_params, input_dim)   # one-time pack

    out = vae_forward_pallas(x, noise, packed)
    jax.block_until_ready(out)

    ref = vae_forward_ref(x, noise, enc_params, dec_params)
    for k in ("imgs", "z", "mean", "logvar"):
        assert out[k].shape == ref[k].shape, k
        assert jnp.allclose(out[k], ref[k], atol=1e-5, rtol=1e-5), k

    print("KERNEL_OK")
</pallas_src>

<mosaic_0001>
module attributes {stable_mosaic.version = 11 : i64} {
  func.func @_vae_kernel(%arg0: i32, %arg1: memref<8x128xf32, #tpu.memory_space<vmem>>, %arg2: memref<9x128x128xf32, #tpu.memory_space<vmem>>, %arg3: memref<9x1x128xf32, #tpu.memory_space<vmem>>, %arg4: memref<8x256xf32, #tpu.memory_space<vmem>>) attributes {dimension_semantics = [#tpu.dimension_semantics<parallel>], iteration_bounds = array<i64: 2>, scalar_prefetch = 0 : i64, scratch_operands = 0 : i64, tpu.core_type = #tpu.core_type<tc>, window_params = [{transform_indices = @transform_0, window_bounds = array<i64: 8, 128>}, {pipeline_mode = #tpu.pipeline_mode<synchronous>, transform_indices = @transform_1, window_bounds = array<i64: 9, 128, 128>}, {pipeline_mode = #tpu.pipeline_mode<synchronous>, transform_indices = @transform_2, window_bounds = array<i64: 9, 1, 128>}, {transform_indices = @transform_3, window_bounds = array<i64: 8, 256>}]} {
    %c0 = arith.constant 0 : index
    %c0_0 = arith.constant 0 : index
    %0 = vector.load %arg1[%c0, %c0_0] : memref<8x128xf32, #tpu.memory_space<vmem>>, vector<8x128xf32>
    %c0_1 = arith.constant 0 : index
    %c0_2 = arith.constant 0 : index
    %c0_3 = arith.constant 0 : index
    %1 = vector.load %arg2[%c0_1, %c0_2, %c0_3] : memref<9x128x128xf32, #tpu.memory_space<vmem>>, vector<1x128x128xf32>
    %2 = vector.shape_cast %1 : vector<1x128x128xf32> to vector<128x128xf32>
    %cst = arith.constant dense<0.000000e+00> : vector<8x128xf32>
    %3 = tpu.matmul %0, %2, %cst {dimension_numbers = #tpu.dot_dimension_numbers<[1], [0], [0], [1], [0, 0, 1, 1], [], []>} : vector<8x128xf32>, vector<128x128xf32>, vector<8x128xf32> -> vector<8x128xf32>
    %c0_4 = arith.constant 0 : index
    %c0_5 = arith.constant 0 : index
    %c0_6 = arith.constant 0 : index
    %4 = vector.load %arg3[%c0_4, %c0_5, %c0_6] : memref<9x1x128xf32, #tpu.memory_space<vmem>>, vector<1x1x128xf32>
    %5 = vector.shape_cast %4 : vector<1x1x128xf32> to vector<1x128xf32>
    %6 = vector.broadcast %5 : vector<1x128xf32> to vector<8x128xf32>
    %7 = arith.addf %3, %6 : vector<8x128xf32>
    %cst_7 = arith.constant 5.000000e-01 : f32
    %8 = vector.broadcast %cst_7 : f32 to vector<8x128xf32>
    %9 = arith.mulf %8, %7 : vector<8x128xf32>
    %cst_8 = arith.constant 0.707106769 : f32
    %10 = vector.broadcast %cst_8 : f32 to vector<8x128xf32>
    %11 = arith.mulf %7, %10 : vector<8x128xf32>
    %12 = math.erf %11 : vector<8x128xf32>
    %cst_9 = arith.constant 1.000000e+00 : f32
    %13 = vector.broadcast %cst_9 : f32 to vector<8x128xf32>
    %14 = arith.addf %13, %12 : vector<8x128xf32>
    %15 = arith.mulf %9, %14 : vector<8x128xf32>
    %c1 = arith.constant 1 : index
    %c0_10 = arith.constant 0 : index
    %c0_11 = arith.constant 0 : index
    %16 = vector.load %arg2[%c1, %c0_10, %c0_11] : memref<9x128x128xf32, #tpu.memory_space<vmem>>, vector<1x128x128xf32>
    %17 = vector.shape_cast %16 : vector<1x128x128xf32> to vector<128x128xf32>
    %cst_12 = arith.constant dense<0.000000e+00> : vector<8x128xf32>
    %18 = tpu.matmul %15, %17, %cst_12 {dimension_numbers = #tpu.dot_dimension_numbers<[1], [0], [0], [1], [0, 0, 1, 1], [], []>} : vector<8x128xf32>, vector<128x128xf32>, vector<8x128xf32> -> vector<8x128xf32>
    %c1_13 = arith.constant 1 : index
    %c0_14 = arith.constant 0 : index
    %c0_15 = arith.constant 0 : index
    %19 = vector.load %arg3[%c1_13, %c0_14, %c0_15] : memref<9x1x128xf32, #tpu.memory_space<vmem>>, vector<1x1x128xf32>
    %20 = vector.shape_cast %19 : vector<1x1x128xf32> to vector<1x128xf32>
    %21 = vector.broadcast %20 : vector<1x128xf32> to vector<8x128xf32>
    %22 = arith.addf %18, %21 : vector<8x128xf32>
    %cst_16 = arith.constant 5.000000e-01 : f32
    %23 = vector.broadcast %cst_16 : f32 to vector<8x128xf32>
    %24 = arith.mulf %23, %22 : vector<8x128xf32>
    %cst_17 = arith.constant 0.707106769 : f32
    %25 = vector.broadcast %cst_17 : f32 to vector<8x128xf32>
    %26 = arith.mulf %22, %25 : vector<8x128xf32>
    %27 = math.erf %26 : vector<8x128xf32>
    %cst_18 = arith.constant 1.000000e+00 : f32
    %28 = vector.broadcast %cst_18 : f32 to vector<8x128xf32>
    %29 = arith.addf %28, %27 : vector<8x128xf32>
    %30 = arith.mulf %24, %29 : vector<8x128xf32>
    %c2 = arith.constant 2 : index
    %c0_19 = arith.constant 0 : index
    %c0_20 = arith.constant 0 : index
    %31 = vector.load %arg2[%c2, %c0_19, %c0_20] : memref<9x128x128xf32, #tpu.memory_space<vmem>>, vector<1x128x128xf32>
    %32 = vector.shape_cast %31 : vector<1x128x128xf32> to vector<128x128xf32>
    %cst_21 = arith.constant dense<0.000000e+00> : vector<8x128xf32>
    %33 = tpu.matmul %30, %32, %cst_21 {dimension_numbers = #tpu.dot_dimension_numbers<[1], [0], [0], [1], [0, 0, 1, 1], [], []>} : vector<8x128xf32>, vector<128x128xf32>, vector<8x128xf32> -> vector<8x128xf32>
    %c2_22 = arith.constant 2 : index
    %c0_23 = arith.constant 0 : index
    %c0_24 = arith.constant 0 : index
    %34 = vector.load %arg3[%c2_22, %c0_23, %c0_24] : memref<9x1x128xf32, #tpu.memory_space<vmem>>, vector<1x1x128xf32>
    %35 = vector.shape_cast %34 : vector<1x1x128xf32> to vector<1x128xf32>
    %36 = vector.broadcast %35 : vector<1x128xf32> to vector<8x128xf32>
    %37 = arith.addf %33, %36 : vector<8x128xf32>
    %cst_25 = arith.constant 5.000000e-01 : f32
    %38 = vector.broadcast %cst_25 : f32 to vector<8x128xf32>
    %39 = arith.mulf %38, %37 : vector<8x128xf32>
    %cst_26 = arith.constant 0.707106769 : f32
    %40 = vector.broadcast %cst_26 : f32 to vector<8x128xf32>
    %41 = arith.mulf %37, %40 : vector<8x128xf32>
    %42 = math.erf %41 : vector<8x128xf32>
    %cst_27 = arith.constant 1.000000e+00 : f32
    %43 = vector.broadcast %cst_27 : f32 to vector<8x128xf32>
    %44 = arith.addf %43, %42 : vector<8x128xf32>
    %45 = arith.mulf %39, %44 : vector<8x128xf32>
    %c3 = arith.constant 3 : index
    %c0_28 = arith.constant 0 : index
    %c0_29 = arith.constant 0 : index
    %46 = vector.load %arg2[%c3, %c0_28, %c0_29] : memref<9x128x128xf32, #tpu.memory_space<vmem>>, vector<1x128x128xf32>
    %47 = vector.shape_cast %46 : vector<1x128x128xf32> to vector<128x128xf32>
    %cst_30 = arith.constant dense<0.000000e+00> : vector<8x128xf32>
    %48 = tpu.matmul %45, %47, %cst_30 {dimension_numbers = #tpu.dot_dimension_numbers<[1], [0], [0], [1], [0, 0, 1, 1], [], []>} : vector<8x128xf32>, vector<128x128xf32>, vector<8x128xf32> -> vector<8x128xf32>
    %c3_31 = arith.constant 3 : index
    %c0_32 = arith.constant 0 : index
    %c0_33 = arith.constant 0 : index
    %49 = vector.load %arg3[%c3_31, %c0_32, %c0_33] : memref<9x1x128xf32, #tpu.memory_space<vmem>>, vector<1x1x128xf32>
    %50 = vector.shape_cast %49 : vector<1x1x128xf32> to vector<1x128xf32>
    %51 = vector.broadcast %50 : vector<1x128xf32> to vector<8x128xf32>
    %52 = arith.addf %48, %51 : vector<8x128xf32>
    %53 = tpu.iota {dimensions = array<i32: 1>} : vector<8x128xi32>
    %c2_i32 = arith.constant 2 : i32
    %54 = vector.broadcast %c2_i32 : i32 to vector<8x128xi32>
    %55 = arith.cmpi slt, %53, %54 : vector<8x128xi32>
    %cst_34 = arith.constant 5.000000e-01 : f32
    %56 = vector.broadcast %cst_34 : f32 to vector<8x128xf32>
    %57 = arith.mulf %56, %52 : vector<8x128xf32>
    %58 = math.exp %57 : vector<8x128xf32>
    %59 = arith.mulf %58, %0 : vector<8x128xf32>
    %60 = arith.select %55, %52, %59 : vector<8x128xi1>, vector<8x128xf32>
    %c4 = arith.constant 4 : index
    %c0_35 = arith.constant 0 : index
    %c0_36 = arith.constant 0 : index
    %61 = vector.load %arg2[%c4, %c0_35, %c0_36] : memref<9x128x128xf32, #tpu.memory_space<vmem>>, vector<1x128x128xf32>
    %62 = vector.shape_cast %61 : vector<1x128x128xf32> to vector<128x128xf32>
    %cst_37 = arith.constant dense<0.000000e+00> : vector<8x128xf32>
    %63 = tpu.matmul %60, %62, %cst_37 {dimension_numbers = #tpu.dot_dimension_numbers<[1], [0], [0], [1], [0, 0, 1, 1], [], []>} : vector<8x128xf32>, vector<128x128xf32>, vector<8x128xf32> -> vector<8x128xf32>
    %c4_38 = arith.constant 4 : index
    %c0_39 = arith.constant 0 : index
    %c0_40 = arith.constant 0 : index
    %64 = vector.load %arg3[%c4_38, %c0_39, %c0_40] : memref<9x1x128xf32, #tpu.memory_space<vmem>>, vector<1x1x128xf32>
    %65 = vector.shape_cast %64 : vector<1x1x128xf32> to vector<1x128xf32>
    %66 = vector.broadcast %65 : vector<1x128xf32> to vector<8x128xf32>
    %67 = arith.addf %63, %66 : vector<8x128xf32>
    %cst_41 = arith.constant 5.000000e-01 : f32
    %68 = vector.broadcast %cst_41 : f32 to vector<8x128xf32>
    %69 = arith.mulf %68, %67 : vector<8x128xf32>
    %cst_42 = arith.constant 0.707106769 : f32
    %70 = vector.broadcast %cst_42 : f32 to vector<8x128xf32>
    %71 = arith.mulf %67, %70 : vector<8x128xf32>
    %72 = math.erf %71 : vector<8x128xf32>
    %cst_43 = arith.constant 1.000000e+00 : f32
    %73 = vector.broadcast %cst_43 : f32 to vector<8x128xf32>
    %74 = arith.addf %73, %72 : vector<8x128xf32>
    %75 = arith.mulf %69, %74 : vector<8x128xf32>
    %c5 = arith.constant 5 : index
    %c0_44 = arith.constant 0 : index
    %c0_45 = arith.constant 0 : index
    %76 = vector.load %arg2[%c5, %c0_44, %c0_45] : memref<9x128x128xf32, #tpu.memory_space<vmem>>, vector<1x128x128xf32>
    %77 = vector.shape_cast %76 : vector<1x128x128xf32> to vector<128x128xf32>
    %cst_46 = arith.constant dense<0.000000e+00> : vector<8x128xf32>
    %78 = tpu.matmul %75, %77, %cst_46 {dimension_numbers = #tpu.dot_dimension_numbers<[1], [0], [0], [1], [0, 0, 1, 1], [], []>} : vector<8x128xf32>, vector<128x128xf32>, vector<8x128xf32> -> vector<8x128xf32>
    %c5_47 = arith.constant 5 : index
    %c0_48 = arith.constant 0 : index
    %c0_49 = arith.constant 0 : index
    %79 = vector.load %arg3[%c5_47, %c0_48, %c0_49] : memref<9x1x128xf32, #tpu.memory_space<vmem>>, vector<1x1x128xf32>
    %80 = vector.shape_cast %79 : vector<1x1x128xf32> to vector<1x128xf32>
    %81 = vector.broadcast %80 : vector<1x128xf32> to vector<8x128xf32>
    %82 = arith.addf %78, %81 : vector<8x128xf32>
    %cst_50 = arith.constant 5.000000e-01 : f32
    %83 = vector.broadcast %cst_50 : f32 to vector<8x128xf32>
    %84 = arith.mulf %83, %82 : vector<8x128xf32>
    %cst_51 = arith.constant 0.707106769 : f32
    %85 = vector.broadcast %cst_51 : f32 to vector<8x128xf32>
    %86 = arith.mulf %82, %85 : vector<8x128xf32>
    %87 = math.erf %86 : vector<8x128xf32>
    %cst_52 = arith.constant 1.000000e+00 : f32
    %88 = vector.broadcast %cst_52 : f32 to vector<8x128xf32>
    %89 = arith.addf %88, %87 : vector<8x128xf32>
    %90 = arith.mulf %84, %89 : vector<8x128xf32>
    %c6 = arith.constant 6 : index
    %c0_53 = arith.constant 0 : index
    %c0_54 = arith.constant 0 : index
    %91 = vector.load %arg2[%c6, %c0_53, %c0_54] : memref<9x128x128xf32, #tpu.memory_space<vmem>>, vector<1x128x128xf32>
    %92 = vector.shape_cast %91 : vector<1x128x128xf32> to vector<128x128xf32>
    %cst_55 = arith.constant dense<0.000000e+00> : vector<8x128xf32>
    %93 = tpu.matmul %90, %92, %cst_55 {dimension_numbers = #tpu.dot_dimension_numbers<[1], [0], [0], [1], [0, 0, 1, 1], [], []>} : vector<8x128xf32>, vector<128x128xf32>, vector<8x128xf32> -> vector<8x128xf32>
    %c6_56 = arith.constant 6 : index
    %c0_57 = arith.constant 0 : index
    %c0_58 = arith.constant 0 : index
    %94 = vector.load %arg3[%c6_56, %c0_57, %c0_58] : memref<9x1x128xf32, #tpu.memory_space<vmem>>, vector<1x1x128xf32>
    %95 = vector.shape_cast %94 : vector<1x1x128xf32> to vector<1x128xf32>
    %96 = vector.broadcast %95 : vector<1x128xf32> to vector<8x128xf32>
    %97 = arith.addf %93, %96 : vector<8x128xf32>
    %cst_59 = arith.constant 5.000000e-01 : f32
    %98 = vector.broadcast %cst_59 : f32 to vector<8x128xf32>
    %99 = arith.mulf %98, %97 : vector<8x128xf32>
    %cst_60 = arith.constant 0.707106769 : f32
    %100 = vector.broadcast %cst_60 : f32 to vector<8x128xf32>
    %101 = arith.mulf %97, %100 : vector<8x128xf32>
    %102 = math.erf %101 : vector<8x128xf32>
    %cst_61 = arith.constant 1.000000e+00 : f32
    %103 = vector.broadcast %cst_61 : f32 to vector<8x128xf32>
    %104 = arith.addf %103, %102 : vector<8x128xf32>
    %105 = arith.mulf %99, %104 : vector<8x128xf32>
    %c7 = arith.constant 7 : index
    %c0_62 = arith.constant 0 : index
    %c0_63 = arith.constant 0 : index
    %106 = vector.load %arg2[%c7, %c0_62, %c0_63] : memref<9x128x128xf32, #tpu.memory_space<vmem>>, vector<1x128x128xf32>
    %107 = vector.shape_cast %106 : vector<1x128x128xf32> to vector<128x128xf32>
    %cst_64 = arith.constant dense<0.000000e+00> : vector<8x128xf32>
    %108 = tpu.matmul %105, %107, %cst_64 {dimension_numbers = #tpu.dot_dimension_numbers<[1], [0], [0], [1], [0, 0, 1, 1], [], []>} : vector<8x128xf32>, vector<128x128xf32>, vector<8x128xf32> -> vector<8x128xf32>
    %c7_65 = arith.constant 7 : index
    %c0_66 = arith.constant 0 : index
    %c0_67 = arith.constant 0 : index
    %109 = vector.load %arg3[%c7_65, %c0_66, %c0_67] : memref<9x1x128xf32, #tpu.memory_space<vmem>>, vector<1x1x128xf32>
    %110 = vector.shape_cast %109 : vector<1x1x128xf32> to vector<1x128xf32>
    %111 = vector.broadcast %110 : vector<1x128xf32> to vector<8x128xf32>
    %112 = arith.addf %108, %111 : vector<8x128xf32>
    %cst_68 = arith.constant 5.000000e-01 : f32
    %113 = vector.broadcast %cst_68 : f32 to vector<8x128xf32>
    %114 = arith.mulf %113, %112 : vector<8x128xf32>
    %cst_69 = arith.constant 0.707106769 : f32
    %115 = vector.broadcast %cst_69 : f32 to vector<8x128xf32>
    %116 = arith.mulf %112, %115 : vector<8x128xf32>
    %117 = math.erf %116 : vector<8x128xf32>
    %cst_70 = arith.constant 1.000000e+00 : f32
    %118 = vector.broadcast %cst_70 : f32 to vector<8x128xf32>
    %119 = arith.addf %118, %117 : vector<8x128xf32>
    %120 = arith.mulf %114, %119 : vector<8x128xf32>
    %c8 = arith.constant 8 : index
    %c0_71 = arith.constant 0 : index
    %c0_72 = arith.constant 0 : index
    %121 = vector.load %arg2[%c8, %c0_71, %c0_72] : memref<9x128x128xf32, #tpu.memory_space<vmem>>, vector<1x128x128xf32>
    %122 = vector.shape_cast %121 : vector<1x128x128xf32> to vector<128x128xf32>
    %cst_73 = arith.constant dense<0.000000e+00> : vector<8x128xf32>
    %123 = tpu.matmul %120, %122, %cst_73 {dimension_numbers = #tpu.dot_dimension_numbers<[1], [0], [0], [1], [0, 0, 1, 1], [], []>} : vector<8x128xf32>, vector<128x128xf32>, vector<8x128xf32> -> vector<8x128xf32>
    %c8_74 = arith.constant 8 : index
    %c0_75 = arith.constant 0 : index
    %c0_76 = arith.constant 0 : index
    %124 = vector.load %arg3[%c8_74, %c0_75, %c0_76] : memref<9x1x128xf32, #tpu.memory_space<vmem>>, vector<1x1x128xf32>
    %125 = vector.shape_cast %124 : vector<1x1x128xf32> to vector<1x128xf32>
    %126 = vector.broadcast %125 : vector<1x128xf32> to vector<8x128xf32>
    %127 = arith.addf %123, %126 : vector<8x128xf32>
    %c0_77 = arith.constant 0 : index
    %c0_78 = arith.constant 0 : index
    %128 = vector.load %arg4[%c0_77, %c0_78] : memref<8x256xf32, #tpu.memory_space<vmem>>, vector<8x128xf32>
    tpu.vector_store %arg4[%c0_77, %c0_78], %127 {strides = array<i32>} : memref<8x256xf32, #tpu.memory_space<vmem>>, vector<8x128xf32>,
    %c0_79 = arith.constant 0 : index
    %c128 = arith.constant 128 : index
    %129 = vector.load %arg4[%c0_79, %c128] : memref<8x256xf32, #tpu.memory_space<vmem>>, vector<8x128xf32>
    tpu.vector_store %arg4[%c0_79, %c128], %52 {strides = array<i32>} : memref<8x256xf32, #tpu.memory_space<vmem>>, vector<8x128xf32>,
    return
  }
  func.func @transform_0(%arg0: i32) -> (i32, i32) {
    %c0_i32 = arith.constant 0 : i32
    %c0_i32_0 = arith.constant 0 : i32
    return %arg0, %c0_i32 : i32, i32
  }
  func.func @transform_1(%arg0: i32) -> (i32, i32, i32) {
    %c0_i32 = arith.constant 0 : i32
    %c0_i32_0 = arith.constant 0 : i32
    %c0_i32_1 = arith.constant 0 : i32
    %c0_i32_2 = arith.constant 0 : i32
    return %c0_i32, %c0_i32_0, %c0_i32_1 : i32, i32, i32
  }
  func.func @transform_2(%arg0: i32) -> (i32, i32, i32) {
    %c0_i32 = arith.constant 0 : i32
    %c0_i32_0 = arith.constant 0 : i32
    %c0_i32_1 = arith.constant 0 : i32
    %c0_i32_2 = arith.constant 0 : i32
    return %c0_i32, %c0_i32_0, %c0_i32_1 : i32, i32, i32
  }
  func.func @transform_3(%arg0: i32) -> (i32, i32) {
    %c0_i32 = arith.constant 0 : i32
    %c0_i32_0 = arith.constant 0 : i32
    return %arg0, %c0_i32 : i32, i32
  }
}

</mosaic_0001>

<bundles_post_ra>
// kernel: tpu_custom_call.1
= control target key start
LH: loop header
LB: loop body
LE: loop exit
PB: predicated region body
PF: predicated region fallthrough
CT: control target
= control target key end

     0   :  { %8 = vsyncpa [#allocation3], 0  ;;  %s1514_s0 = inlined_call_operand.hbm [shape: f32[16,128], index: 0, kind: input, shape index: {}]   ;;  %s1515_s1 = inlined_call_operand.hbm [shape: f32[9,128,128], index: 1, kind: input, shape index: {}]   ;;  %s1516_s2 = inlined_call_operand.hbm [shape: f32[9,1,128], index: 2, kind: input, shape index: {}]   ;;  %s1517_s3 = inlined_call_operand.hbm [shape: f32[16,256], index: 3, kind: output, shape index: {}]  }
   0x1   :  { %10 = vsyncpa [#allocation3 + $0x1], 0 }
   0x2   :  { %11 = vsyncpa [#allocation6], 0 }
   0x3   :  { %12 = vsyncpa [#allocation4], 0 }
   0x4   :  { %14 = vsyncpa [#allocation4 + $0x1], 0  ;;  %s1331_s12 = smov 0   ;;  %s1333_s13 = smov 0  }
   0x5   :  { %s1335_s14 = smov 0   ;;  %s1337_s15 = smov 0  }
   0x6 LB: > { %s130_s18 = sshll.u32 %s1515_s1, 4  ;;  %s1355_s19 = sadd.s32 4294967295, %s1303_s15   ;;  %s1303_s15 = sphi %s1337_s15, %s1528_s15   ;;  %s1299_s14 = sphi %s1335_s14, %s1527_s14   ;;  %s1295_s13 = sphi %s1333_s13, %s1526_s13   ;;  %s1291_s12 = sphi %s1331_s12, %s1525_s12   ;;  %s131_s18 = int_to_ptr.hbm [resolvable:$true] %s130_s18 }
   0x7   : > { %p1023_p0 = scmp.ge.s32.totalorder %s1303_s15, 1  ;;  %p41_p1 = scmp.eq.s32.totalorder %s1355_s19, 0 }
   0x8   : > { %p119_p2 = scmp.lt.s32.totalorder %s1303_s15, 3  ;;  %s1305_s21 = smov [#allocation5]  }
   0x9   : > { %s132_s22 = sshll.u32 %s1305_s21, 4  ;;  %s144_s25 = sshll.u32 %s1516_s2, 4  ;;  %s133_s22 = int_to_ptr.vmem [resolvable:$true] %s132_s22  ;;  %s145_s25 = int_to_ptr.hbm [resolvable:$true] %s144_s25 }
   0xa   : > { %p1360_p3 = pnand %p1023_p0, %p119_p2  ;;  %s1306_s26 = smov [#allocation7]  }
   0xb   : > { %s146_s27 = sshll.u32 %s1306_s26, 4  ;;  %s1307_s28 = smov 128   ;;  %s147_s27 = int_to_ptr.vmem [resolvable:$true] %s146_s27 }
   0xc   : > { %p1059_p4 = pneg %p1360_p3  ;;  %s1308_s29 = smov 8  }
   0xd   : > { %s1309_s30 = smov 16   ;;  %s1310_s4 = smov 1  }
   0xe   : > { %p1060_p6 = pnand %p1059_p4, %p41_p1  ;;  %s1022_s5 = sadd.s32 4294967294, %s1303_s15  }
   0xf   : > { %s1374_s6 = sadd.s32 1, %s1303_s15   ;;  %s27_s8 = sadd.s32 1, %s1299_s14 }
  0x10   : > { %1062 = dma.hbm_to_vmem [thread:$0]  (!%p1060_p6), %s131_s18, 18432, %s133_s22, [#allocation6], %s1307_s28, %s1307_s28, %s1308_s29  }
  0x11   : > { %1065 = dma.hbm_to_vmem [thread:$0]  (!%p1060_p6), %s145_s25, 144, %s147_s27, [#allocation6], %s1309_s30, %s1309_s30, %s1310_s4  }
  0x12   : > { %s24_s7 = ssub.s32 %s1303_s15, %s1374_s6  ;;  %p34_p8 = scmp.ne.s32.totalorder %s1299_s14, %s1295_s13 }
  0x13   : > { %p25_p7 = scmp.eq.s32.totalorder %s24_s7, 0  ;;  %p35_p9 = scmp.eq.s32.totalorder %s1303_s15, 0 }
  0x14   : > { %p40_p10 = scmp.ne.s32.totalorder %s1295_s13, %s1291_s12  ;;  %p106_p13 = scmp.eq.s32.totalorder %s1355_s19, 1 }
  0x15   : > { %s1385_s9 = scalar_select %p25_p7, %s1299_s14, %s27_s8  }
  0x16   : > { %p1387_p11 = por %p35_p9, %p34_p8  ;;  %p1393_p12 = por %p41_p1, %p40_p10 }
  0x17   : > { %p112_p0 = scmp.eq.s32.totalorder %s1022_s5, 1  ;;  %p1076_p2 = scmp.lt.s32.totalorder %s1303_s15, 2 }
  0x18   : > { %s160_s16 = sand.u32 1, %s1299_s14   ;;  %p1400_p4 = por %p106_p13, %p34_p8 }
  0x19   : > { %p1404_p6 = por %p112_p0, %p40_p10  ;;  %s1027_s21 = sshll.u32 %s160_s16, 3 }
  0x1a   : > { %s1028_s22 = sshll.u32 %s1303_s15, 3  ;;  %s164_s26 = scalar_lea.vmem [#allocation2], %s1027_s21 }
  0x1b   : > { %s168_s25 = scalar_lea.hbm %s1514_s0, %s1028_s22  ;;  %s172_s27 = sshll.u32 %s164_s26, 4  ;;  %s173_s27 = int_to_ptr.vmem [resolvable:$true] %s172_s27 }
  0x1c   : > { %s170_s28 = sshll.u32 %s168_s25, 4  ;;  %p1414_p7 = pnand %p1076_p2, %p1387_p11  ;;  %s171_s28 = int_to_ptr.hbm [resolvable:$true] %s170_s28 }
  0x1d   : > { %s161_s30 = scalar_lea.sflag [#allocation3], %s160_s16  ;;  %s1203_s4 = sshra.s32 %s171_s28, 4  ;;  %s1204_s4 = int_to_ptr.hbm [resolvable:$true] %s1203_s4 }
  0x1e   : > { %s1205_s5 = scalar_lea.hbm %s1204_s4, 8  ;;  %p1207_p9 = pneg %p1414_p7 }
  0x1f   : > { %p1206_p8 = scmp.ne.s32.totalorder %s1204_s4, %s1205_s5  ;;  %s1210_s21 = scalar_lea.hbm %s1514_s0, 16 }
  0x20   : > { %p1211_p11 = scmp.lt.s32.totalorder %s1204_s4, %s1514_s0  ;;  %p1212_p0 = scmp.lt.s32.totalorder %s1210_s21, %s1205_s5 }
  0x21   : > { %p1208_p10 = pnand %p1207_p9, %p1206_p8 }
  0x22   : > { %p1213_p2 = por %p1212_p0, %p1211_p11 }
  0x23   : > { %p1209_p13 = pneg %p1208_p10 }
  0x25   : > { %p1214_p5 = pnand %p1213_p2, %p1209_p13 }
  0x27   : > { %1217 = shalt.err (!%p1214_p5)
}
  0x28   : > { %1069 = dma.hbm_to_vmem [thread:$0]  (!%p1414_p7), %s171_s28, 128, %s173_s27, %s161_s30  }
  0x29   : > { %181 = sbr.rel (%p1360_p3) target bundleno = 1631 (0x65f), region = 32  ;;  %s1431_s16 = sand.u32 (!%p1360_p3), 1, %s1295_s13  }
  0x2a   : > { %s1030_s23 = sshll.u32 (!%p1360_p3), %s1431_s16, 3  ;;  %s184_s24 = scalar_lea.sflag (!%p1360_p3), [#allocation3], %s1431_s16 }
  0x2b   : > { %s1435_s25 = scalar_lea.vmem (!%p1360_p3), [#allocation2], %s1030_s23 }
  0x2e   : > { %1278 = dma.done.wait (%p1393_p12), %s184_s24, 128  }
  0x2f   : > { %1280 = vsyncadd (%p1393_p12), %s184_s24, 4294967168 }
  0x30   : > { %1282 = dma.done.wait (%p41_p1), [#allocation6], 18576  }
  0x31   : > { %1284 = vsyncadd (%p41_p1), [#allocation6], 4294948720  ;;  %v237_v0 = vld [vmem:[#allocation5 + $0x78] sm:$0xff]  ;;  %v236_v1 = vld [vmem:[#allocation5 + $0x70] sm:$0xff]  ;;  %s1033_s20 = sshll.u32 %s1431_s16, 4  ;;  %s1046_s26 = sshll.u32 %s1355_s19, 4 }
  0x32   : > { %242 = vmatpush.msra.mxu0 %v237_v0  ;;  %v235_v2 = vld [vmem:[#allocation5 + $0x68] sm:$0xff]  ;;  %v234_v3 = vld [vmem:[#allocation5 + $0x60] sm:$0xff]  ;;  %v233_v4 = vld [vmem:[#allocation5 + $0x58] sm:$0xff]  ;;  %s1459_s11 = scalar_lea.vmem [#allocation8], %s1033_s20  ;;  %s928_s29 = scalar_lea.hbm %s1517_s3, %s1046_s26 }
  0x33   : > { %v232_v5 = vld [vmem:[#allocation5 + $0x50] sm:$0xff]  ;;  %v231_v6 = vld [vmem:[#allocation5 + $0x48] sm:$0xff]  ;;  %v230_v7 = vld [vmem:[#allocation5 + $0x40] sm:$0xff]  ;;  %s930_s30 = sshll.u32 %s1459_s11, 4  ;;  %s932_s4 = sshll.u32 %s928_s29, 4  ;;  %s931_s30 = int_to_ptr.vmem [resolvable:$true] %s930_s30  ;;  %s933_s4 = int_to_ptr.hbm [resolvable:$true] %s932_s4 }
  0x34   : > { %243 = vmatpush.msra.mxu0 %v236_v1  ;;  %v229_v8 = vld [vmem:[#allocation5 + $0x38] sm:$0xff]  ;;  %v228_v9 = vld [vmem:[#allocation5 + $0x30] sm:$0xff]  ;;  %v227_v10 = vld [vmem:[#allocation5 + $0x28] sm:$0xff]  ;;  %s917_s5 = scalar_lea.sflag [#allocation4], %s1431_s16  ;;  %s1247_s7 = sshra.s32 %s933_s4, 4  ;;  %s1248_s7 = int_to_ptr.hbm [resolvable:$true] %s1247_s7 }
  0x35   : > { %v226_v11 = vld [vmem:[#allocation5 + $0x20] sm:$0xff]  ;;  %v225_v12 = vld [vmem:[#allocation5 + $0x18] sm:$0xff]  ;;  %v224_v13 = vld [vmem:[#allocation5 + $0x10] sm:$0xff]  ;;  %s1249_s8 = scalar_lea.hbm %s1248_s7, 16  ;;  %s1253_s22 = scalar_lea.hbm %s1517_s3, 32 }
  0x36   : > { %244 = vmatpush.msra.mxu0 %v235_v2  ;;  %v223_v14 = vld [vmem:[#allocation5 + $0x8] sm:$0xff]  ;;  %v222_v15 = vld [vmem:[#allocation5] sm:$0xff]  ;;  %v1446_v16 = vld [vmem:[%s1435_s25] sm:$0xff]  ;;  %p1250_p1 = scmp.ne.s32.totalorder %s1248_s7, %s1249_s8  ;;  %p1254_p12 = scmp.lt.s32.totalorder %s1248_s7, %s1517_s3 }
  0x37   : > { %v322_v17 = vld [vmem:[#allocation5 + $0xf8] sm:$0xff]  ;;  %v321_v18 = vld [vmem:[#allocation5 + $0xf0] sm:$0xff]  ;;  %v320_v19 = vld [vmem:[#allocation5 + $0xe8] sm:$0xff]  ;;  %p1255_p7 = scmp.lt.s32.totalorder %s1253_s22, %s1249_s8 }
  0x38   : > { %245 = vmatpush.msra.mxu0 %v234_v3  ;;  %328 = vmatpush.msra.mxu1 %v322_v17  ;;  %v319_v20 = vld [vmem:[#allocation5 + $0xe0] sm:$0xff]  ;;  %v318_v22 = vld [vmem:[#allocation5 + $0xd8] sm:$0xff]  ;;  %v317_v23 = vld [vmem:[#allocation5 + $0xd0] sm:$0xff]  ;;  %p1251_p3 = pnand %p1250_p1, %p1400_p4 }
  0x39   : > { %v1118_v21 = vld [vmem:[#allocation7] ss:$0 sm:$0xff]  ;;  %v316_v25 = vld [vmem:[#allocation5 + $0xc8] sm:$0xff]  ;;  %v314_v29 = vld [vmem:[#allocation5 + $0xb8] sm:$0xff]  ;;  %p1256_p8 = por %p1255_p7, %p1254_p12 }
  0x3a   : > { %246 = vmatpush.msra.mxu0 %v233_v4  ;;  %329 = vmatpush.msra.mxu1 %v321_v18  ;;  %v315_v27 = vld [vmem:[#allocation5 + $0xc0] sm:$0xff]  ;;  %v313_v31 = vld [vmem:[#allocation5 + $0xb0] sm:$0xff]  ;;  %v312_v33 = vld [vmem:[#allocation5 + $0xa8] sm:$0xff]  ;;  %p1252_p5 = pneg %p1251_p3 }
  0x3b   : > { %v311_v36 = vld [vmem:[#allocation5 + $0xa0] sm:$0xff]  ;;  %v310_v39 = vld [vmem:[#allocation5 + $0x98] sm:$0xff]  ;;  %v309_v42 = vld [vmem:[#allocation5 + $0x90] sm:$0xff] }
  0x3c   : > { %247 = vmatpush.msra.mxu0 %v232_v5  ;;  %330 = vmatpush.msra.mxu1 %v320_v19  ;;  %v308_v45 = vld [vmem:[#allocation5 + $0x88] sm:$0xff]  ;;  %v307_v47 = vld [vmem:[#allocation5 + $0x80] sm:$0xff]  ;;  %v404_v17 = vld [vmem:[#allocation5 + $0x158] sm:$0xff]  ;;  %p1257_p9 = pnand %p1256_p8, %p1252_p5 }
  0x3d   : > { %v403_v18 = vld [vmem:[#allocation5 + $0x150] sm:$0xff] }
  0x3e   : > { %248 = vmatpush.msra.mxu0 %v231_v6  ;;  %331 = vmatpush.msra.mxu1 %v319_v20 }
  0x40   : > { %249 = vmatpush.msra.mxu0 %v230_v7  ;;  %332 = vmatpush.msra.mxu1 %v318_v22 }
  0x42   : > { %250 = vmatpush.msra.mxu0 %v229_v8  ;;  %333 = vmatpush.msra.mxu1 %v317_v23  ;;  %v401_v23 = vld [vmem:[#allocation5 + $0x140] sm:$0xff] }
  0x44   : > { %251 = vmatpush.msra.mxu0 %v228_v9  ;;  %334 = vmatpush.msra.mxu1 %v316_v25  ;;  %v400_v25 = vld [vmem:[#allocation5 + $0x138] sm:$0xff] }
  0x46   : > { %252 = vmatpush.msra.mxu0 %v227_v10  ;;  %335 = vmatpush.msra.mxu1 %v315_v27  ;;  %v399_v27 = vld [vmem:[#allocation5 + $0x130] sm:$0xff] }
  0x48   : > { %253 = vmatpush.msra.mxu0 %v226_v11  ;;  %336 = vmatpush.msra.mxu1 %v314_v29  ;;  %v408_v11 = vld [vmem:[#allocation5 + $0x178] sm:$0xff]  ;;  %v398_v29 = vld [vmem:[#allocation5 + $0x128] sm:$0xff] }
  0x49   : > { %414 = vmatpush.msra.mxu2 %v408_v11  ;;  %v490_v11 = vld [vmem:[#allocation5 + $0x1d8] sm:$0xff] }
  0x4a   : > { %254 = vmatpush.msra.mxu0 %v225_v12  ;;  %337 = vmatpush.msra.mxu1 %v313_v31  ;;  %v407_v12 = vld [vmem:[#allocation5 + $0x170] sm:$0xff] }
  0x4b   : > { %415 = vmatpush.msra.mxu2 %v407_v12  ;;  %v489_v12 = vld [vmem:[#allocation5 + $0x1d0] sm:$0xff] }
  0x4c   : > { %255 = vmatpush.msra.mxu0 %v224_v13  ;;  %338 = vmatpush.msra.mxu1 %v312_v33  ;;  %v406_v13 = vld [vmem:[#allocation5 + $0x168] sm:$0xff] }
  0x4d   : > { %416 = vmatpush.msra.mxu2 %v406_v13 }
  0x4e   : > { %256 = vmatpush.msra.mxu0 %v223_v14  ;;  %339 = vmatpush.msra.mxu1 %v311_v36  ;;  %v1119_v14 = vld [vmem:[#allocation7 + $0x1] ss:$0 sm:$0xff] }
  0x50   : > { %257 = vmatpush.msra.mxu0 %v222_v15  ;;  %340 = vmatpush.msra.mxu1 %v310_v39  ;;  %v405_v15 = vld [vmem:[#allocation5 + $0x160] sm:$0xff] }
  0x51   : > { %258 = vmatmul.f32.vlgmr.msra.gmra.mxu0 %v1446_v16  ;;  %417 = vmatpush.msra.mxu2 %v405_v15  ;;  %v488_v15 = vld [vmem:[#allocation5 + $0x1c8] sm:$0xff] }
  0x52   : > { %341 = vmatpush.msra.mxu1 %v309_v42  ;;  %v393_v42 = vld [vmem:[#allocation5 + $0x100] sm:$0xff] }
  0x53   : > { %418 = vmatpush.msra.mxu2 %v404_v17 }
  0x54   : > { %342 = vmatpush.msra.mxu1 %v308_v45 }
  0x55   : > { %419 = vmatpush.msra.mxu2 %v403_v18  ;;  %v487_v18 = vld [vmem:[#allocation5 + $0x1c0] sm:$0xff] }
  0x56   : > { %343 = vmatpush.msra.mxu1 %v307_v47 }
  0xce   : > { %v259_v24 = vpop.f32.mrf.mxu0 }
  0xcf   : > { %v260_v26 = vadd.f32 %v1118_v21, %v259_v24  ;;  %v402_v21 = vld [vmem:[#allocation5 + $0x148] sm:$0xff] }
  0xd0   : > { %420 = vmatpush.msra.mxu2 %v402_v21 }
  0xd1   : > { %v263_v28 = vmul.f32 0.70710677, %v260_v26  ;;  %v262_v8 = vmul.f32 0.5, %v260_v26 }
  0xd2   : > { %421 = vmatpush.msra.mxu2 %v401_v23 }
  0xd3   : > { %v264_v30 = vmul.f32 %v263_v28, %v263_v28 }
  0xd4   : > { %422 = vmatpush.msra.mxu2 %v400_v25 }
  0xd5   : > { %v265_v32 = vmin.f32 %v264_v30, 16.0 }
  0xd6   : > { %423 = vmatpush.msra.mxu2 %v399_v27  ;;  %v483_v27 = vld [vmem:[#allocation5 + $0x1a0] sm:$0xff] }
  0xd7   : > { %v266_v34 = vmul.f32 2.1237322e-06, %v265_v32  ;;  %v277_v35 = vmul.f32 3.8918573e-05, %v265_v32 }
  0xd8   : > { %424 = vmatpush.msra.mxu2 %v398_v29 }
  0xd9   : > { %v267_v37 = vadd.f32 0.00028619796, %v266_v34  ;;  %v278_v38 = vadd.f32 0.001143296, %v277_v35  ;;  %v396_v35 = vld [vmem:[#allocation5 + $0x118] sm:$0xff] }
  0xdb   : > { %v268_v40 = vmul.f32 %v267_v37, %v265_v32  ;;  %v279_v41 = vmul.f32 %v278_v38, %v265_v32  ;;  %v395_v37 = vld [vmem:[#allocation5 + $0x110] sm:$0xff] }
  0xdd   : > { %v280_v43 = vadd.f32 0.014752088, %v279_v41  ;;  %v269_v44 = vadd.f32 0.0036580483, %v268_v40  ;;  %v394_v40 = vld [vmem:[#allocation5 + $0x108] sm:$0xff] }
  0xdf   : > { %v281_v46 = vmul.f32 %v280_v43, %v265_v32  ;;  %v270_v49 = vmul.f32 %v269_v44, %v265_v32 }
  0xe1   : > { %v282_v48 = vadd.f32 0.112945676, %v281_v46  ;;  %v271_v52 = vadd.f32 0.05243302, %v270_v49 }
  0xe3   : > { %v283_v50 = vmul.f32 %v282_v48, %v265_v32  ;;  %v272_v55 = vmul.f32 %v271_v52, %v265_v32 }
  0xe5   : > { %v284_v51 = vadd.f32 0.4994258, %v283_v50  ;;  %v273_v56 = vadd.f32 0.18741608, %v272_v55 }
  0xe7   : > { %v285_v53 = vmul.f32 %v284_v51, %v265_v32  ;;  %v274_v58 = vmul.f32 %v273_v56, %v265_v32  ;;  %v397_v32 = vld [vmem:[#allocation5 + $0x120] sm:$0xff] }
  0xe8   : > { %425 = vmatpush.msra.mxu2 %v397_v32  ;;  %v481_v32 = vld [vmem:[#allocation5 + $0x190] sm:$0xff] }
  0xe9   : > { %v286_v54 = vadd.f32 1.0, %v285_v53  ;;  %v275_v62 = vadd.f32 1.1283791, %v274_v58 }
  0xea   : > { %426 = vmatpush.msra.mxu2 %v396_v35  ;;  %v480_v35 = vld [vmem:[#allocation5 + $0x188] sm:$0xff] }
  0xeb   : > { %1127 = vrcp.f32 %v286_v54  ;;  %v298_v61 = vand.u32 2147483648, %v286_v54  ;;  %v296_v0 = vand.u32 2147483647, %v286_v54  ;;  %vm292_vm1 = vweird.f32 %v286_v54 }
  0xec   : > { %v276_v3 = vmul.f32 %v275_v62, %v263_v28  ;;  %427 = vmatpush.msra.mxu2 %v395_v37  ;;  %v479_v37 = vld [vmem:[#allocation5 + $0x180] sm:$0xff] }
  0xed   : > { %v299_v2 = vor.u32 1.1754944e-38, %v298_v61  ;;  %vm297_vm3 = vcmp.eq.f32.partialorder %v296_v0, 8.507059e+37 }
  0xee   : > { %428 = vmatpush.msra.mxu2 %v394_v40 }
  0xf0   : > { %429 = vmatpush.msra.mxu2 %v393_v42  ;;  %v543_v42 = vld [vmem:[#allocation5 + $0x270] sm:$0xff] }
  0xf1   : > { %v1128_v57 = vpop.eup %1127 }
  0xf2   : > { %v288_v59 = vmul.f32 %v1128_v57, %v286_v54  ;;  %vm293_vm0 = vweird.f32 %v1128_v57 }
  0xf3   : > { %vm294_vm2 = vmor %vm292_vm1, %vm293_vm0 }
  0xf4   : > { %v289_v60 = vsub.f32 1.0, %v288_v59 }
  0xf6   : > { %v290_v63 = vmul.f32 %v1128_v57, %v289_v60 }
  0xf8   : > { %v291_v1 = vadd.f32 %v1128_v57, %v290_v63 }
  0xfa   : > { %v295_v4 = vsel %vm294_vm2, %v1128_v57, %v291_v1 }
  0xfb   : > { %v300_v5 = vsel %vm297_vm3, %v299_v2, %v295_v4 }
  0xfc   : > { %v301_v6 = vmul.f32 %v300_v5, %v276_v3 }
  0xfe   : > { %v1034_v7 = vclamps-f32 %v301_v6, 1.0  ;;  %v494_v6 = vld [vmem:[#allocation5 + $0x1f8] sm:$0xff] }
  0xff   : > { %500 = vmatpush.msra.mxu3 %v494_v6 }
 0x100   : > { %v304_v9 = vadd.f32 1.0, %v1034_v7  ;;  %v493_v7 = vld [vmem:[#allocation5 + $0x1f0] sm:$0xff] }
 0x101   : > { %501 = vmatpush.msra.mxu3 %v493_v7 }
 0x102   : > { %v305_v10 = vmul.f32 %v304_v9, %v262_v8  ;;  %v492_v8 = vld [vmem:[#allocation5 + $0x1e8] sm:$0xff]  ;;  %v1120_v9 = vld [vmem:[#allocation7 + $0x2] ss:$0 sm:$0xff] }
 0x103   : > { %502 = vmatpush.msra.mxu3 %v492_v8  ;;  %v537_v8 = vld [vmem:[#allocation5 + $0x240] sm:$0xff] }
 0x104   : > { %344 = vmatmul.f32.vlgmr.msra.gmra.mxu1 %v305_v10  ;;  %v491_v10 = vld [vmem:[#allocation5 + $0x1e0] sm:$0xff] }
 0x105   : > { %503 = vmatpush.msra.mxu3 %v491_v10  ;;  %v535_v10 = vld [vmem:[#allocation5 + $0x230] sm:$0xff] }
 0x107   : > { %504 = vmatpush.msra.mxu3 %v490_v11  ;;  %v534_v11 = vld [vmem:[#allocation5 + $0x228] sm:$0xff] }
 0x109   : > { %505 = vmatpush.msra.mxu3 %v489_v12  ;;  %v533_v12 = vld [vmem:[#allocation5 + $0x220] sm:$0xff] }
 0x10b   : > { %506 = vmatpush.msra.mxu3 %v488_v15  ;;  %v531_v15 = vld [vmem:[#allocation5 + $0x210] sm:$0xff] }
 0x10d   : > { %507 = vmatpush.msra.mxu3 %v487_v18  ;;  %v1121_v18 = vld [vmem:[#allocation7 + $0x3] ss:$0 sm:$0xff] }
 0x181   : > { %v345_v19 = vpop.f32.mrf.mxu1 }
 0x182   : > { %v346_v20 = vadd.f32 %v1119_v14, %v345_v19 }
 0x184   : > { %v349_v22 = vmul.f32 0.70710677, %v346_v20  ;;  %v348_v3 = vmul.f32 0.5, %v346_v20  ;;  %v486_v20 = vld [vmem:[#allocation5 + $0x1b8] sm:$0xff] }
 0x185   : > { %508 = vmatpush.msra.mxu3 %v486_v20 }
 0x186   : > { %v350_v24 = vmul.f32 %v349_v22, %v349_v22 }
 0x188   : > { %v351_v26 = vmin.f32 %v350_v24, 16.0  ;;  %v484_v24 = vld [vmem:[#allocation5 + $0x1a8] sm:$0xff] }
 0x18a   : > { %v352_v28 = vmul.f32 2.1237322e-06, %v351_v26  ;;  %v363_v30 = vmul.f32 3.8918573e-05, %v351_v26 }
 0x18c   : > { %v353_v31 = vadd.f32 0.00028619796, %v352_v28  ;;  %v364_v33 = vadd.f32 0.001143296, %v363_v30  ;;  %v482_v30 = vld [vmem:[#allocation5 + $0x198] sm:$0xff] }
 0x18e   : > { %v354_v34 = vmul.f32 %v353_v31, %v351_v26  ;;  %v365_v36 = vmul.f32 %v364_v33, %v351_v26 }
 0x190   : > { %v366_v38 = vadd.f32 0.014752088, %v365_v36  ;;  %v355_v39 = vadd.f32 0.0036580483, %v354_v34 }
 0x192   : > { %v367_v41 = vmul.f32 %v366_v38, %v351_v26  ;;  %v356_v44 = vmul.f32 %v355_v39, %v351_v26 }
 0x194   : > { %v368_v43 = vadd.f32 0.112945676, %v367_v41  ;;  %v357_v47 = vadd.f32 0.05243302, %v356_v44  ;;  %v544_v41 = vld [vmem:[#allocation5 + $0x278] sm:$0xff] }
 0x195   : > { %550 = vmatpush.msrb.mxu0 %v544_v41  ;;  %v622_v41 = vld [vmem:[#allocation5 + $0x2b8] sm:$0xff] }
 0x196   : > { %v369_v45 = vmul.f32 %v368_v43, %v351_v26  ;;  %v358_v50 = vmul.f32 %v357_v47, %v351_v26  ;;  %v541_v47 = vld [vmem:[#allocation5 + $0x260] sm:$0xff] }
 0x197   : > { %551 = vmatpush.msrb.mxu0 %v543_v42 }
 0x198   : > { %v370_v46 = vadd.f32 0.4994258, %v369_v45  ;;  %v359_v51 = vadd.f32 0.18741608, %v358_v50  ;;  %v542_v45 = vld [vmem:[#allocation5 + $0x268] sm:$0xff]  ;;  %v540_v50 = vld [vmem:[#allocation5 + $0x258] sm:$0xff] }
 0x199   : > { %552 = vmatpush.msrb.mxu0 %v542_v45 }
 0x19a   : > { %v371_v48 = vmul.f32 %v370_v46, %v351_v26  ;;  %v360_v53 = vmul.f32 %v359_v51, %v351_v26  ;;  %v539_v51 = vld [vmem:[#allocation5 + $0x250] sm:$0xff] }
 0x19b   : > { %553 = vmatpush.msrb.mxu0 %v541_v47  ;;  %v620_v47 = vld [vmem:[#allocation5 + $0x2a8] sm:$0xff] }
 0x19c   : > { %v372_v49 = vadd.f32 1.0, %v371_v48  ;;  %v361_v57 = vadd.f32 1.1283791, %v360_v53  ;;  %v538_v53 = vld [vmem:[#allocation5 + $0x248] sm:$0xff] }
 0x19d   : > { %554 = vmatpush.msrb.mxu0 %v540_v50  ;;  %v619_v50 = vld [vmem:[#allocation5 + $0x2a0] sm:$0xff] }
 0x19e   : > { %1129 = vrcp.f32 %v372_v49  ;;  %v384_v56 = vand.u32 2147483648, %v372_v49  ;;  %v382_v59 = vand.u32 2147483647, %v372_v49  ;;  %vm378_vm5 = vweird.f32 %v372_v49 }
 0x19f   : > { %v362_v62 = vmul.f32 %v361_v57, %v349_v22  ;;  %v485_v22 = vld [vmem:[#allocation5 + $0x1b0] sm:$0xff]  ;;  %555 = vmatpush.msrb.mxu0 %v539_v51  ;;  %v618_v51 = vld [vmem:[#allocation5 + $0x298] sm:$0xff] }
 0x1a0   : > { %v385_v61 = vor.u32 1.1754944e-38, %v384_v56  ;;  %vm383_vm7 = vcmp.eq.f32.partialorder %v382_v59, 8.507059e+37  ;;  %509 = vmatpush.msra.mxu3 %v485_v22 }
 0x1a1   : > { %556 = vmatpush.msrb.mxu0 %v538_v53  ;;  %v617_v53 = vld [vmem:[#allocation5 + $0x290] sm:$0xff] }
 0x1a2   : > { %510 = vmatpush.msra.mxu3 %v484_v24 }
 0x1a3   : > { %557 = vmatpush.msrb.mxu0 %v537_v8 }
 0x1a4   : > { %v1130_v52 = vpop.eup %1129  ;;  %511 = vmatpush.msra.mxu3 %v483_v27 }
 0x1a5   : > { %v374_v54 = vmul.f32 %v1130_v52, %v372_v49  ;;  %vm379_vm4 = vweird.f32 %v1130_v52 }
 0x1a6   : > { %vm380_vm6 = vmor %vm378_vm5, %vm379_vm4  ;;  %512 = vmatpush.msra.mxu3 %v482_v30  ;;  %v628_v30 = vld [vmem:[#allocation5 + $0x2e8] sm:$0xff] }
 0x1a7   : > { %v375_v55 = vsub.f32 1.0, %v374_v54 }
 0x1a8   : > { %513 = vmatpush.msra.mxu3 %v481_v32  ;;  %v627_v32 = vld [vmem:[#allocation5 + $0x2e0] sm:$0xff] }
 0x1a9   : > { %v376_v58 = vmul.f32 %v1130_v52, %v375_v55 }
 0x1aa   : > { %514 = vmatpush.msra.mxu3 %v480_v35 }
 0x1ab   : > { %v377_v60 = vadd.f32 %v1130_v52, %v376_v58 }
 0x1ac   : > { %515 = vmatpush.msra.mxu3 %v479_v37  ;;  %v624_v37 = vld [vmem:[#allocation5 + $0x2c8] sm:$0xff] }
 0x1ad   : > { %v381_v63 = vsel %vm380_vm6, %v1130_v52, %v377_v60 }
 0x1ae   : > { %v386_v0 = vsel %vm383_vm7, %v385_v61, %v381_v63 }
 0x1af   : > { %v387_v1 = vmul.f32 %v386_v0, %v362_v62 }
 0x1b1   : > { %v1035_v2 = vclamps-f32 %v387_v1, 1.0 }
 0x1b3   : > { %v390_v4 = vadd.f32 1.0, %v1035_v2 }
 0x1b5   : > { %v391_v5 = vmul.f32 %v390_v4, %v348_v3 }
 0x1b7   : > { %430 = vmatmul.f32.vlgmr.msra.gmra.mxu2 %v391_v5 }
 0x23a   : > { %v431_v13 = vpop.f32.mrf.mxu2 }
 0x23b   : > { %v1449_v14 = vadd.f32 %v1120_v9, %v431_v13  ;;  %v536_v9 = vld [vmem:[#allocation5 + $0x238] sm:$0xff] }
 0x23c   : > { %558 = vmatpush.msrb.mxu0 %v536_v9  ;;  %v532_v13 = vld [vmem:[#allocation5 + $0x218] sm:$0xff] }
 0x23d   : > { %v1452_v17 = vmul.f32 0.70710677, %v1449_v14  ;;  %v434_v5 = vmul.f32 0.5, %v1449_v14  ;;  %v529_v14 = vld [vmem:[#allocation5 + $0x200] sm:$0xff] }
 0x23e   : > { %559 = vmatpush.msrb.mxu0 %v535_v10 }
 0x23f   : > { %v436_v19 = vmul.f32 %v1452_v17, %v1452_v17 }
 0x240   : > { %560 = vmatpush.msrb.mxu0 %v534_v11 }
 0x241   : > { %v437_v21 = vmin.f32 %v436_v19, 16.0 }
 0x242   : > { %561 = vmatpush.msrb.mxu0 %v533_v12 }
 0x243   : > { %v438_v23 = vmul.f32 2.1237322e-06, %v437_v21  ;;  %v449_v25 = vmul.f32 3.8918573e-05, %v437_v21 }
 0x244   : > { %562 = vmatpush.msrb.mxu0 %v532_v13 }
 0x245   : > { %v439_v26 = vadd.f32 0.00028619796, %v438_v23  ;;  %v450_v28 = vadd.f32 0.001143296, %v449_v25  ;;  %v520_v23 = vlaneseq }
 0x246   : > { %563 = vmatpush.msrb.mxu0 %v531_v15 }
 0x247   : > { %v440_v29 = vmul.f32 %v439_v26, %v437_v21  ;;  %v451_v31 = vmul.f32 %v450_v28, %v437_v21  ;;  %v521_v24 = vand.u32 127, %v520_v23  ;;  %v630_v28 = vld [vmem:[#allocation5 + $0x2f8] sm:$0xff]  ;;  %v715_v23 = vld [vmem:[#allocation5 + $0x370] sm:$0xff] }
 0x248   : > { %636 = vmatpush.msrb.mxu1 %v630_v28 }
 0x249   : > { %v452_v33 = vadd.f32 0.014752088, %v451_v31  ;;  %v441_v34 = vadd.f32 0.0036580483, %v440_v29  ;;  %vm522_vm12 = vcmp.lt.s32.totalorder %v521_v24, 2  ;;  %v629_v29 = vld [vmem:[#allocation5 + $0x2f0] sm:$0xff] }
 0x24a   : > { %637 = vmatpush.msrb.mxu1 %v629_v29  ;;  %v1122_v31 = vld [vmem:[#allocation7 + $0x4] ss:$0 sm:$0xff]  ;;  %v714_v24 = vld [vmem:[#allocation5 + $0x368] sm:$0xff] }
 0x24b   : > { %v453_v36 = vmul.f32 %v452_v33, %v437_v21  ;;  %v442_v39 = vmul.f32 %v441_v34, %v437_v21  ;;  %v626_v33 = vld [vmem:[#allocation5 + $0x2d8] sm:$0xff] }
 0x24c   : > { %638 = vmatpush.msrb.mxu1 %v628_v30  ;;  %v711_v30 = vld [vmem:[#allocation5 + $0x350] sm:$0xff] }
 0x24d   : > { %v454_v38 = vadd.f32 0.112945676, %v453_v36  ;;  %v443_v44 = vadd.f32 0.05243302, %v442_v39  ;;  %v625_v36 = vld [vmem:[#allocation5 + $0x2d0] sm:$0xff]  ;;  %v623_v39 = vld [vmem:[#allocation5 + $0x2c0] sm:$0xff] }
 0x24e   : > { %639 = vmatpush.msrb.mxu1 %v627_v32  ;;  %v710_v32 = vld [vmem:[#allocation5 + $0x348] sm:$0xff] }
 0x24f   : > { %v455_v40 = vmul.f32 %v454_v38, %v437_v21  ;;  %v444_v49 = vmul.f32 %v443_v44, %v437_v21  ;;  %v621_v44 = vld [vmem:[#allocation5 + $0x2b0] sm:$0xff] }
 0x250   : > { %640 = vmatpush.msrb.mxu1 %v626_v33 }
 0x251   : > { %v456_v43 = vadd.f32 0.4994258, %v455_v40  ;;  %v445_v52 = vadd.f32 0.18741608, %v444_v49 }
 0x252   : > { %641 = vmatpush.msrb.mxu1 %v625_v36  ;;  %v708_v36 = vld [vmem:[#allocation5 + $0x338] sm:$0xff] }
 0x253   : > { %v457_v46 = vmul.f32 %v456_v43, %v437_v21  ;;  %v446_v55 = vmul.f32 %v445_v52, %v437_v21 }
 0x254   : > { %642 = vmatpush.msrb.mxu1 %v624_v37 }
 0x255   : > { %v458_v48 = vadd.f32 1.0, %v457_v46  ;;  %v447_v59 = vadd.f32 1.1283791, %v446_v55 }
 0x256   : > { %643 = vmatpush.msrb.mxu1 %v623_v39 }
 0x257   : > { %1131 = vrcp.f32 %v458_v48  ;;  %v470_v58 = vand.u32 2147483648, %v458_v48  ;;  %v468_v61 = vand.u32 2147483647, %v458_v48  ;;  %vm464_vm9 = vweird.f32 %v458_v48 }
 0x258   : > { %v448_v0 = vmul.f32 %v447_v59, %v1452_v17  ;;  %v530_v17 = vld [vmem:[#allocation5 + $0x208] sm:$0xff]  ;;  %644 = vmatpush.msrb.mxu1 %v622_v41 }
 0x259   : > { %v471_v63 = vor.u32 1.1754944e-38, %v470_v58  ;;  %vm469_vm11 = vcmp.eq.f32.partialorder %v468_v61, 8.507059e+37  ;;  %564 = vmatpush.msrb.mxu0 %v530_v17  ;;  %v615_v58 = vld [vmem:[#allocation5 + $0x280] sm:$0xff]  ;;  %v706_v41 = vld [vmem:[#allocation5 + $0x328] sm:$0xff] }
 0x25a   : > { %645 = vmatpush.msrb.mxu1 %v621_v44  ;;  %v705_v44 = vld [vmem:[#allocation5 + $0x320] sm:$0xff] }
 0x25b   : > { %565 = vmatpush.msrb.mxu0 %v529_v14 }
 0x25c   : > { %646 = vmatpush.msrb.mxu1 %v620_v47  ;;  %v703_v47 = vld [vmem:[#allocation5 + $0x310] sm:$0xff] }
 0x25d   : > { %v1132_v54 = vpop.eup %1131 }
 0x25e   : > { %v460_v56 = vmul.f32 %v1132_v54, %v458_v48  ;;  %vm465_vm8 = vweird.f32 %v1132_v54  ;;  %647 = vmatpush.msrb.mxu1 %v619_v50  ;;  %v702_v50 = vld [vmem:[#allocation5 + $0x308] sm:$0xff] }
 0x25f   : > { %vm466_vm10 = vmor %vm464_vm9, %vm465_vm8 }
 0x260   : > { %v461_v57 = vsub.f32 1.0, %v460_v56  ;;  %648 = vmatpush.msrb.mxu1 %v618_v51  ;;  %v616_v56 = vld [vmem:[#allocation5 + $0x288] sm:$0xff] }
 0x262   : > { %v462_v60 = vmul.f32 %v1132_v54, %v461_v57  ;;  %649 = vmatpush.msrb.mxu1 %v617_v53 }
 0x264   : > { %v463_v62 = vadd.f32 %v1132_v54, %v462_v60  ;;  %650 = vmatpush.msrb.mxu1 %v616_v56 }
 0x266   : > { %v467_v1 = vsel %vm466_vm10, %v1132_v54, %v463_v62  ;;  %651 = vmatpush.msrb.mxu1 %v615_v58 }
 0x267   : > { %v472_v2 = vsel %vm469_vm11, %v471_v63, %v467_v1 }
 0x268   : > { %v473_v3 = vmul.f32 %v472_v2, %v448_v0 }
 0x26a   : > { %v1036_v4 = vclamps-f32 %v473_v3, 1.0 }
 0x26c   : > { %v476_v6 = vadd.f32 1.0, %v1036_v4 }
 0x26e   : > { %v477_v7 = vmul.f32 %v476_v6, %v434_v5 }
 0x270   : > { %516 = vmatmul.f32.vlgmr.msra.gmra.mxu3 %v477_v7 }
 0x2f3   : > { %v517_v19 = vpop.f32.mrf.mxu3 }
 0x2f4   : > { %v518_v20 = vadd.f32 %v1121_v18, %v517_v19 }
 0x2f6   : > { %v523_v21 = vmul.f32 0.5, %v518_v20  ;;  %915 = vst [vmem:[%s1459_s11 + $0x8] sm:$0xff] %v518_v20 }
 0x2f8   : > { %v524_v22 = vmul.f32 1.442695, %v523_v21 }
 0x2fa   : > { %1133 = vpow2.f32 %v524_v22  ;;  %v716_v22 = vld [vmem:[#allocation5 + $0x378] sm:$0xff] }
 0x2fb   : > { %722 = vmatpush.msrb.mxu2 %v716_v22 }
 0x2fd   : > { %723 = vmatpush.msrb.mxu2 %v715_v23 }
 0x2ff   : > { %724 = vmatpush.msrb.mxu2 %v714_v24  ;;  %v797_v24 = vld [vmem:[#allocation5 + $0x3d0] sm:$0xff] }
 0x300   : > { %v1134_v25 = vpop.eup %1133 }
 0x301   : > { %v526_v26 = vmul.f32 %v1134_v25, %v1446_v16  ;;  %v1123_v25 = vld [vmem:[#allocation7 + $0x5] ss:$0 sm:$0xff] }
 0x303   : > { %v527_v27 = vsel %vm522_vm12, %v518_v20, %v526_v26  ;;  %v713_v26 = vld [vmem:[#allocation5 + $0x360] sm:$0xff] }
 0x304   : > { %566 = vmatmul.f32.vlgmr.msrb.gmra.mxu0 %v527_v27  ;;  %725 = vmatpush.msrb.mxu2 %v713_v26  ;;  %v712_v27 = vld [vmem:[#allocation5 + $0x358] sm:$0xff]  ;;  %v796_v26 = vld [vmem:[#allocation5 + $0x3c8] sm:$0xff] }
 0x306   : > { %726 = vmatpush.msrb.mxu2 %v712_v27 }
 0x308   : > { %727 = vmatpush.msrb.mxu2 %v711_v30  ;;  %v794_v30 = vld [vmem:[#allocation5 + $0x3b8] sm:$0xff] }
 0x30a   : > { %728 = vmatpush.msrb.mxu2 %v710_v32 }
 0x381   : > { %v567_v34 = vpop.f32.mrf.mxu0 }
 0x382   : > { %v1463_v35 = vadd.f32 %v1122_v31, %v567_v34  ;;  %v709_v34 = vld [vmem:[#allocation5 + $0x340] sm:$0xff] }
 0x383   : > { %729 = vmatpush.msrb.mxu2 %v709_v34 }
 0x384   : > { %v571_v16 = vmul.f32 0.70710677, %v1463_v35  ;;  %v570_v19 = vmul.f32 0.5, %v1463_v35 }
 0x385   : > { %730 = vmatpush.msrb.mxu2 %v708_v36  ;;  %v792_v36 = vld [vmem:[#allocation5 + $0x3a8] sm:$0xff] }
 0x386   : > { %v572_v38 = vmul.f32 %v571_v16, %v571_v16 }
 0x388   : > { %v573_v40 = vmin.f32 %v572_v38, 16.0  ;;  %v707_v38 = vld [vmem:[#allocation5 + $0x330] sm:$0xff] }
 0x389   : > { %731 = vmatpush.msrb.mxu2 %v707_v38  ;;  %v791_v38 = vld [vmem:[#allocation5 + $0x3a0] sm:$0xff] }
 0x38a   : > { %v574_v42 = vmul.f32 2.1237322e-06, %v573_v40  ;;  %v585_v43 = vmul.f32 3.8918573e-05, %v573_v40 }
 0x38b   : > { %732 = vmatpush.msrb.mxu2 %v706_v41  ;;  %v789_v41 = vld [vmem:[#allocation5 + $0x390] sm:$0xff] }
 0x38c   : > { %v575_v45 = vadd.f32 0.00028619796, %v574_v42  ;;  %v586_v46 = vadd.f32 0.001143296, %v585_v43 }
 0x38d   : > { %733 = vmatpush.msrb.mxu2 %v705_v44  ;;  %v788_v44 = vld [vmem:[#allocation5 + $0x388] sm:$0xff] }
 0x38e   : > { %v576_v48 = vmul.f32 %v575_v45, %v573_v40  ;;  %v587_v49 = vmul.f32 %v586_v46, %v573_v40  ;;  %v704_v45 = vld [vmem:[#allocation5 + $0x318] sm:$0xff] }
 0x38f   : > { %734 = vmatpush.msrb.mxu2 %v704_v45 }
 0x390   : > { %v588_v52 = vadd.f32 0.014752088, %v587_v49  ;;  %v577_v54 = vadd.f32 0.0036580483, %v576_v48 }
 0x391   : > { %735 = vmatpush.msrb.mxu2 %v703_v47 }
 0x392   : > { %v589_v55 = vmul.f32 %v588_v52, %v573_v40  ;;  %v578_v59 = vmul.f32 %v577_v54, %v573_v40  ;;  %v701_v52 = vld [vmem:[#allocation5 + $0x300] sm:$0xff] }
 0x393   : > { %736 = vmatpush.msrb.mxu2 %v702_v50 }
 0x394   : > { %v590_v57 = vadd.f32 0.112945676, %v589_v55  ;;  %v579_v62 = vadd.f32 0.05243302, %v578_v59 }
 0x395   : > { %737 = vmatpush.msrb.mxu2 %v701_v52 }
 0x396   : > { %v591_v60 = vmul.f32 %v590_v57, %v573_v40  ;;  %v580_v1 = vmul.f32 %v579_v62, %v573_v40 }
 0x398   : > { %v592_v61 = vadd.f32 0.4994258, %v591_v60  ;;  %v581_v2 = vadd.f32 0.18741608, %v580_v1 }
 0x39a   : > { %v593_v63 = vmul.f32 %v592_v61, %v573_v40  ;;  %v582_v4 = vmul.f32 %v581_v2, %v573_v40 }
 0x39c   : > { %v594_v0 = vadd.f32 1.0, %v593_v63  ;;  %v583_v8 = vadd.f32 1.1283791, %v582_v4 }
 0x39e   : > { %1135 = vrcp.f32 %v594_v0  ;;  %v606_v7 = vand.u32 2147483648, %v594_v0  ;;  %v604_v10 = vand.u32 2147483647, %v594_v0  ;;  %vm600_vm14 = vweird.f32 %v594_v0 }
 0x39f   : > { %v584_v13 = vmul.f32 %v583_v8, %v571_v16 }
 0x3a0   : > { %v607_v12 = vor.u32 1.1754944e-38, %v606_v7  ;;  %vm605_vm0 = vcmp.eq.f32.partialorder %v604_v10, 8.507059e+37 }
 0x3a4   : > { %v1136_v3 = vpop.eup %1135 }
 0x3a5   : > { %v596_v5 = vmul.f32 %v1136_v3, %v594_v0  ;;  %vm601_vm13 = vweird.f32 %v1136_v3 }
 0x3a6   : > { %vm602_vm15 = vmor %vm600_vm14, %vm601_vm13 }
 0x3a7   : > { %v597_v6 = vsub.f32 1.0, %v596_v5 }
 0x3a9   : > { %v598_v9 = vmul.f32 %v1136_v3, %v597_v6 }
 0x3ab   : > { %v599_v11 = vadd.f32 %v1136_v3, %v598_v9 }
 0x3ad   : > { %v603_v15 = vsel %vm602_vm15, %v1136_v3, %v599_v11 }
 0x3ae   : > { %v608_v17 = vsel %vm605_vm0, %v607_v12, %v603_v15 }
 0x3af   : > { %v609_v14 = vmul.f32 %v608_v17, %v584_v13  ;;  %v802_v17 = vld [vmem:[#allocation5 + $0x3f8] sm:$0xff] }
 0x3b0   : > { %808 = vmatpush.msrb.mxu3 %v802_v17 }
 0x3b1   : > { %v1037_v18 = vclamps-f32 %v609_v14, 1.0  ;;  %v801_v14 = vld [vmem:[#allocation5 + $0x3f0] sm:$0xff] }
 0x3b2   : > { %809 = vmatpush.msrb.mxu3 %v801_v14 }
 0x3b3   : > { %v612_v20 = vadd.f32 1.0, %v1037_v18  ;;  %v800_v18 = vld [vmem:[#allocation5 + $0x3e8] sm:$0xff] }
 0x3b4   : > { %810 = vmatpush.msrb.mxu3 %v800_v18  ;;  %v883_v18 = vld [vmem:[#allocation5 + $0x450] sm:$0xff] }
 0x3b5   : > { %v613_v21 = vmul.f32 %v612_v20, %v570_v19  ;;  %v1124_v19 = vld [vmem:[#allocation7 + $0x6] ss:$0 sm:$0xff] }
 0x3b6   : > { %v799_v20 = vld [vmem:[#allocation5 + $0x3e0] sm:$0xff] }
 0x3b7   : > { %652 = vmatmul.f32.vlgmr.msrb.gmra.mxu1 %v613_v21  ;;  %811 = vmatpush.msrb.mxu3 %v799_v20  ;;  %v798_v21 = vld [vmem:[#allocation5 + $0x3d8] sm:$0xff]  ;;  %v882_v20 = vld [vmem:[#allocation5 + $0x448] sm:$0xff] }
 0x3b9   : > { %812 = vmatpush.msrb.mxu3 %v798_v21 }
 0x3bb   : > { %813 = vmatpush.msrb.mxu3 %v797_v24  ;;  %v880_v24 = vld [vmem:[#allocation5 + $0x438] sm:$0xff] }
 0x3bd   : > { %814 = vmatpush.msrb.mxu3 %v796_v26 }
 0x434   : > { %v653_v28 = vpop.f32.mrf.mxu1 }
 0x435   : > { %v1467_v29 = vadd.f32 %v1123_v25, %v653_v28  ;;  %v795_v28 = vld [vmem:[#allocation5 + $0x3c0] sm:$0xff] }
 0x436   : > { %815 = vmatpush.msrb.mxu3 %v795_v28 }
 0x437   : > { %v657_v31 = vmul.f32 0.70710677, %v1467_v29  ;;  %v656_v12 = vmul.f32 0.5, %v1467_v29 }
 0x438   : > { %816 = vmatpush.msrb.mxu3 %v794_v30  ;;  %v878_v30 = vld [vmem:[#allocation5 + $0x428] sm:$0xff] }
 0x439   : > { %v658_v33 = vmul.f32 %v657_v31, %v657_v31 }
 0x43b   : > { %v659_v35 = vmin.f32 %v658_v33, 16.0  ;;  %v793_v33 = vld [vmem:[#allocation5 + $0x3b0] sm:$0xff] }
 0x43c   : > { %817 = vmatpush.msrb.mxu3 %v793_v33  ;;  %v877_v33 = vld [vmem:[#allocation5 + $0x420] sm:$0xff] }
 0x43d   : > { %v660_v16 = vmul.f32 2.1237322e-06, %v659_v35  ;;  %v671_v37 = vmul.f32 3.8918573e-05, %v659_v35 }
 0x43e   : > { %818 = vmatpush.msrb.mxu3 %v792_v36 }
 0x43f   : > { %v661_v39 = vadd.f32 0.00028619796, %v660_v16  ;;  %v672_v40 = vadd.f32 0.001143296, %v671_v37 }
 0x440   : > { %819 = vmatpush.msrb.mxu3 %v791_v38 }
 0x441   : > { %v662_v42 = vmul.f32 %v661_v39, %v659_v35  ;;  %v673_v43 = vmul.f32 %v672_v40, %v659_v35  ;;  %v790_v39 = vld [vmem:[#allocation5 + $0x398] sm:$0xff] }
 0x442   : > { %820 = vmatpush.msrb.mxu3 %v790_v39  ;;  %v874_v39 = vld [vmem:[#allocation5 + $0x408] sm:$0xff] }
 0x443   : > { %v674_v46 = vadd.f32 0.014752088, %v673_v43  ;;  %v663_v48 = vadd.f32 0.0036580483, %v662_v42 }
 0x444   : > { %821 = vmatpush.msrb.mxu3 %v789_v41  ;;  %v873_v41 = vld [vmem:[#allocation5 + $0x400] sm:$0xff] }
 0x445   : > { %v675_v49 = vmul.f32 %v674_v46, %v659_v35  ;;  %v664_v53 = vmul.f32 %v663_v48, %v659_v35  ;;  %v787_v46 = vld [vmem:[#allocation5 + $0x380] sm:$0xff] }
 0x446   : > { %822 = vmatpush.msrb.mxu3 %v788_v44 }
 0x447   : > { %v676_v51 = vadd.f32 0.112945676, %v675_v49  ;;  %v665_v56 = vadd.f32 0.05243302, %v664_v53 }
 0x448   : > { %823 = vmatpush.msrb.mxu3 %v787_v46 }
 0x449   : > { %v677_v54 = vmul.f32 %v676_v51, %v659_v35  ;;  %v666_v59 = vmul.f32 %v665_v56, %v659_v35 }
 0x44b   : > { %v678_v55 = vadd.f32 0.4994258, %v677_v54  ;;  %v667_v60 = vadd.f32 0.18741608, %v666_v59 }
 0x44d   : > { %v679_v57 = vmul.f32 %v678_v55, %v659_v35  ;;  %v668_v62 = vmul.f32 %v667_v60, %v659_v35 }
 0x44f   : > { %v680_v58 = vadd.f32 1.0, %v679_v57  ;;  %v669_v2 = vadd.f32 1.1283791, %v668_v62 }
 0x451   : > { %1137 = vrcp.f32 %v680_v58  ;;  %v692_v1 = vand.u32 2147483648, %v680_v58  ;;  %v690_v4 = vand.u32 2147483647, %v680_v58  ;;  %vm686_vm2 = vweird.f32 %v680_v58 }
 0x452   : > { %v670_v7 = vmul.f32 %v669_v2, %v657_v31 }
 0x453   : > { %v693_v6 = vor.u32 1.1754944e-38, %v692_v1  ;;  %vm691_vm4 = vcmp.eq.f32.partialorder %v690_v4, 8.507059e+37 }
 0x457   : > { %v1138_v61 = vpop.eup %1137 }
 0x458   : > { %v682_v63 = vmul.f32 %v1138_v61, %v680_v58  ;;  %vm687_vm1 = vweird.f32 %v1138_v61 }
 0x459   : > { %vm688_vm3 = vmor %vm686_vm2, %vm687_vm1 }
 0x45a   : > { %v683_v0 = vsub.f32 1.0, %v682_v63 }
 0x45c   : > { %v684_v3 = vmul.f32 %v1138_v61, %v683_v0 }
 0x45e   : > { %v685_v5 = vadd.f32 %v1138_v61, %v684_v3 }
 0x460   : > { %v689_v8 = vsel %vm688_vm3, %v1138_v61, %v685_v5 }
 0x461   : > { %v694_v9 = vsel %vm691_vm4, %v693_v6, %v689_v8 }
 0x462   : > { %v695_v10 = vmul.f32 %v694_v9, %v670_v7  ;;  %v888_v9 = vld [vmem:[#allocation5 + $0x478] sm:$0xff] }
 0x463   : > { %894 = vmatpush.msra.mxu0 %v888_v9 }
 0x464   : > { %v1038_v11 = vclamps-f32 %v695_v10, 1.0  ;;  %v887_v10 = vld [vmem:[#allocation5 + $0x470] sm:$0xff] }
 0x465   : > { %895 = vmatpush.msra.mxu0 %v887_v10 }
 0x466   : > { %v698_v13 = vadd.f32 1.0, %v1038_v11  ;;  %v886_v11 = vld [vmem:[#allocation5 + $0x468] sm:$0xff] }
 0x467   : > { %896 = vmatpush.msra.mxu0 %v886_v11 }
 0x468   : > { %v699_v15 = vmul.f32 %v698_v13, %v656_v12  ;;  %v1125_v12 = vld [vmem:[#allocation7 + $0x7] ss:$0 sm:$0xff] }
 0x469   : > { %v885_v13 = vld [vmem:[#allocation5 + $0x460] sm:$0xff] }
 0x46a   : > { %738 = vmatmul.f32.vlgmr.msrb.gmra.mxu2 %v699_v15  ;;  %897 = vmatpush.msra.mxu0 %v885_v13  ;;  %v884_v15 = vld [vmem:[#allocation5 + $0x458] sm:$0xff] }
 0x46c   : > { %898 = vmatpush.msra.mxu0 %v884_v15 }
 0x46e   : > { %899 = vmatpush.msra.mxu0 %v883_v18 }
 0x470   : > { %900 = vmatpush.msra.mxu0 %v882_v20 }
 0x4ed   : > { %v739_v22 = vpop.f32.mrf.mxu2 }
 0x4ee   : > { %v1471_v23 = vadd.f32 %v1124_v19, %v739_v22  ;;  %v881_v22 = vld [vmem:[#allocation5 + $0x440] sm:$0xff] }
 0x4ef   : > { %901 = vmatpush.msra.mxu0 %v881_v22 }
 0x4f0   : > { %v743_v25 = vmul.f32 0.70710677, %v1471_v23  ;;  %v742_v6 = vmul.f32 0.5, %v1471_v23 }
 0x4f1   : > { %902 = vmatpush.msra.mxu0 %v880_v24 }
 0x4f2   : > { %v744_v27 = vmul.f32 %v743_v25, %v743_v25 }
 0x4f4   : > { %v745_v29 = vmin.f32 %v744_v27, 16.0  ;;  %v879_v27 = vld [vmem:[#allocation5 + $0x430] sm:$0xff] }
 0x4f5   : > { %903 = vmatpush.msra.mxu0 %v879_v27 }
 0x4f6   : > { %v746_v31 = vmul.f32 2.1237322e-06, %v745_v29  ;;  %v757_v32 = vmul.f32 3.8918573e-05, %v745_v29 }
 0x4f7   : > { %904 = vmatpush.msra.mxu0 %v878_v30 }
 0x4f8   : > { %v747_v34 = vadd.f32 0.00028619796, %v746_v31  ;;  %v758_v35 = vadd.f32 0.001143296, %v757_v32 }
 0x4f9   : > { %905 = vmatpush.msra.mxu0 %v877_v33 }
 0x4fa   : > { %v748_v16 = vmul.f32 %v747_v34, %v745_v29  ;;  %v759_v37 = vmul.f32 %v758_v35, %v745_v29  ;;  %v876_v35 = vld [vmem:[#allocation5 + $0x418] sm:$0xff] }
 0x4fb   : > { %906 = vmatpush.msra.mxu0 %v876_v35 }
 0x4fc   : > { %v760_v40 = vadd.f32 0.014752088, %v759_v37  ;;  %v749_v42 = vadd.f32 0.0036580483, %v748_v16  ;;  %v875_v37 = vld [vmem:[#allocation5 + $0x410] sm:$0xff] }
 0x4fd   : > { %907 = vmatpush.msra.mxu0 %v875_v37 }
 0x4fe   : > { %v761_v43 = vmul.f32 %v760_v40, %v745_v29  ;;  %v750_v47 = vmul.f32 %v749_v42, %v745_v29 }
 0x4ff   : > { %908 = vmatpush.msra.mxu0 %v874_v39 }
 0x500   : > { %v762_v45 = vadd.f32 0.112945676, %v761_v43  ;;  %v751_v50 = vadd.f32 0.05243302, %v750_v47 }
 0x501   : > { %909 = vmatpush.msra.mxu0 %v873_v41 }
 0x502   : > { %v763_v48 = vmul.f32 %v762_v45, %v745_v29  ;;  %v752_v53 = vmul.f32 %v751_v50, %v745_v29 }
 0x504   : > { %v764_v49 = vadd.f32 0.4994258, %v763_v48  ;;  %v753_v54 = vadd.f32 0.18741608, %v752_v53 }
 0x506   : > { %v765_v51 = vmul.f32 %v764_v49, %v745_v29  ;;  %v754_v56 = vmul.f32 %v753_v54, %v745_v29 }
 0x508   : > { %v766_v52 = vadd.f32 1.0, %v765_v51  ;;  %v755_v60 = vadd.f32 1.1283791, %v754_v56 }
 0x50a   : > { %1139 = vrcp.f32 %v766_v52  ;;  %v778_v59 = vand.u32 2147483648, %v766_v52  ;;  %v776_v62 = vand.u32 2147483647, %v766_v52  ;;  %vm772_vm6 = vweird.f32 %v766_v52 }
 0x50b   : > { %v756_v1 = vmul.f32 %v755_v60, %v743_v25 }
 0x50c   : > { %v779_v0 = vor.u32 1.1754944e-38, %v778_v59  ;;  %vm777_vm8 = vcmp.eq.f32.partialorder %v776_v62, 8.507059e+37 }
 0x510   : > { %v1140_v55 = vpop.eup %1139 }
 0x511   : > { %v768_v57 = vmul.f32 %v1140_v55, %v766_v52  ;;  %vm773_vm5 = vweird.f32 %v1140_v55 }
 0x512   : > { %vm774_vm7 = vmor %vm772_vm6, %vm773_vm5 }
 0x513   : > { %v769_v58 = vsub.f32 1.0, %v768_v57 }
 0x515   : > { %v770_v61 = vmul.f32 %v1140_v55, %v769_v58 }
 0x517   : > { %v771_v63 = vadd.f32 %v1140_v55, %v770_v61 }
 0x519   : > { %v775_v2 = vsel %vm774_vm7, %v1140_v55, %v771_v63 }
 0x51a   : > { %v780_v3 = vsel %vm777_vm8, %v779_v0, %v775_v2 }
 0x51b   : > { %v781_v4 = vmul.f32 %v780_v3, %v756_v1  ;;  %v1126_v3 = vld [vmem:[#allocation7 + $0x8] ss:$0 sm:$0xff] }
 0x51d   : > { %v1039_v5 = vclamps-f32 %v781_v4, 1.0 }
 0x51f   : > { %v784_v7 = vadd.f32 1.0, %v1039_v5 }
 0x521   : > { %v785_v8 = vmul.f32 %v784_v7, %v742_v6 }
 0x523   : > { %824 = vmatmul.f32.vlgmr.msrb.gmra.mxu3 %v785_v8 }
 0x5a6   : > { %v825_v17 = vpop.f32.mrf.mxu3 }
 0x5a7   : > { %v1475_v14 = vadd.f32 %v1125_v12, %v825_v17 }
 0x5a9   : > { %v829_v19 = vmul.f32 0.70710677, %v1475_v14  ;;  %v828_v0 = vmul.f32 0.5, %v1475_v14 }
 0x5ab   : > { %v830_v21 = vmul.f32 %v829_v19, %v829_v19 }
 0x5ad   : > { %v831_v23 = vmin.f32 %v830_v21, 16.0 }
 0x5af   : > { %v832_v25 = vmul.f32 2.1237322e-06, %v831_v23  ;;  %v843_v26 = vmul.f32 3.8918573e-05, %v831_v23 }
 0x5b1   : > { %v833_v28 = vadd.f32 0.00028619796, %v832_v25  ;;  %v844_v29 = vadd.f32 0.001143296, %v843_v26 }
 0x5b3   : > { %v834_v31 = vmul.f32 %v833_v28, %v831_v23  ;;  %v845_v32 = vmul.f32 %v844_v29, %v831_v23 }
 0x5b5   : > { %v846_v34 = vadd.f32 0.014752088, %v845_v32  ;;  %v835_v36 = vadd.f32 0.0036580483, %v834_v31 }
 0x5b7   : > { %v847_v16 = vmul.f32 %v846_v34, %v831_v23  ;;  %v836_v40 = vmul.f32 %v835_v36, %v831_v23 }
 0x5b9   : > { %v848_v38 = vadd.f32 0.112945676, %v847_v16  ;;  %v837_v44 = vadd.f32 0.05243302, %v836_v40 }
 0x5bb   : > { %v849_v42 = vmul.f32 %v848_v38, %v831_v23  ;;  %v838_v47 = vmul.f32 %v837_v44, %v831_v23 }
 0x5bd   : > { %v850_v43 = vadd.f32 0.4994258, %v849_v42  ;;  %v839_v48 = vadd.f32 0.18741608, %v838_v47 }
 0x5bf   : > { %v851_v45 = vmul.f32 %v850_v43, %v831_v23  ;;  %v840_v50 = vmul.f32 %v839_v48, %v831_v23 }
 0x5c1   : > { %v852_v46 = vadd.f32 1.0, %v851_v45  ;;  %v841_v54 = vadd.f32 1.1283791, %v840_v50 }
 0x5c3   : > { %1141 = vrcp.f32 %v852_v46  ;;  %v864_v53 = vand.u32 2147483648, %v852_v46  ;;  %v862_v56 = vand.u32 2147483647, %v852_v46  ;;  %vm858_vm10 = vweird.f32 %v852_v46 }
 0x5c4   : > { %v842_v59 = vmul.f32 %v841_v54, %v829_v19 }
 0x5c5   : > { %v865_v58 = vor.u32 1.1754944e-38, %v864_v53  ;;  %vm863_vm12 = vcmp.eq.f32.partialorder %v862_v56, 8.507059e+37 }
 0x5c9   : > { %v1142_v49 = vpop.eup %1141 }
 0x5ca   : > { %v854_v51 = vmul.f32 %v1142_v49, %v852_v46  ;;  %vm859_vm9 = vweird.f32 %v1142_v49 }
 0x5cb   : > { %vm860_vm11 = vmor %vm858_vm10, %vm859_vm9 }
 0x5cc   : > { %v855_v52 = vsub.f32 1.0, %v854_v51 }
 0x5ce   : > { %v856_v55 = vmul.f32 %v1142_v49, %v855_v52 }
 0x5d0   : > { %v857_v57 = vadd.f32 %v1142_v49, %v856_v55 }
 0x5d2   : > { %v861_v60 = vsel %vm860_vm11, %v1142_v49, %v857_v57 }
 0x5d3   : > { %v866_v61 = vsel %vm863_vm12, %v865_v58, %v861_v60 }
 0x5d4   : > { %v867_v62 = vmul.f32 %v866_v61, %v842_v59 }
 0x5d6   : > { %v1040_v63 = vclamps-f32 %v867_v62, 1.0 }
 0x5d8   : > { %v870_v1 = vadd.f32 1.0, %v1040_v63 }
 0x5da   : > { %v871_v2 = vmul.f32 %v870_v1, %v828_v0 }
 0x5dc   : > { %910 = vmatmul.f32.vlgmr.msra.gmra.mxu0 %v871_v2 }
 0x659   : > { %v911_v4 = vpop.f32.mrf.mxu0 }
 0x65a   : > { %v912_v5 = vadd.f32 %v1126_v3, %v911_v4 }
 0x65c   : > { %914 = vst [vmem:[%s1459_s11] sm:$0xff] %v912_v5 }
 0x65d   : > { %1260 = shalt.err (!%p1257_p9)
}
 0x65e   : > { %1057 = dma.vmem_to_hbm [thread:$0]  (%p1400_p4), %s931_s30, 256, %s933_s4, %s917_s5  }
 0x65f PF: > { %s944_s16 = sand.u32 1, %s1291_s12   ;;  %p1524_p10 = scmp.ge.s32.totalorder %s1303_s15, 2 }
 0x660   : > { %s945_s24 = scalar_lea.sflag [#allocation4], %s944_s16 }
 0x661   : > { %p1071_p13 = pnand %p1524_p10, %p1404_p6 }
 0x663   : > { %p1072_p11 = pneg %p1071_p13 }
 0x665   : > { %1286 = dma.done.wait (%p1072_p11), %s945_s24, 256  }
 0x666   : > { %1288 = vsyncadd (%p1072_p11), %s945_s24, 4294967040  ;;  %p17_p0 = scmp.ge.s32.totalorder %s1374_s6, 4   ;;  %s1525_s12 = smov %s1295_s13 }
 0x667   : > { %s1526_s13 = smov %s1299_s14  ;;  %s1527_s14 = smov %s1385_s9 }
 0x668   : > { %s1528_s15 = smov %s1374_s6  ;;  %19 = sbr.rel (!%p17_p0) target bundleno = 6 (0x6), region = 101 }
 0x66d   :  { %951 = vsyncpa [#allocation3], 1 }
 0x66e   :  { %953 = vsyncpa [#allocation3 + $0x1], 1 }
 0x66f   :  { %954 = vsyncpa [#allocation6], 1 }
 0x670   :  { %955 = vsyncpa [#allocation4], 1 }
 0x671   :  { %957 = vsyncpa [#allocation4 + $0x1], 1 }

</bundles_post_ra>
